<compile_context>
chip_gen: v7x
topology: tpu7x:2x2x1
jax: 0.10.0
libtpu: 0.0.40
codegen_flags: <defaults>
</compile_context>

<pallas_src>
import functools

import jax
import jax.numpy as jnp
from jax.experimental import pallas as pl
from jax.experimental.pallas import tpu as pltpu


def _masked_reward_kernel(rewards_ref, keep_ref, list_ref, psum_ref, *,
                          tiles_per_split, total_tiles, mask_tail):
    """Process one (C, TR, 128) slab of reports.

    rewards_ref: (C, TR, 128) f32  reward components, reports packed onto the
                 sublane and lane axes (full vreg occupancy).
    keep_ref:    (1, TR, 128) i8   1 for non-empty reports, 0 for empty /
                 padding / out-of-bounds reports (broadcast over C in-kernel,
                 so no (C, N) mask is materialized in HBM).
    list_ref:    (C, TR, 128) f32  fused output: rewards with empties zeroed
                 (lane-dense 128-wide stores).
    psum_ref:    (1, C, 128)  f32  per-core-split partial sums; resident
                 across the reduction axis (same block index for every t), so
                 no full-tile accumulator scratch is needed.
    """
    t = pl.program_id(1)

    keep = keep_ref[...] != 0                              # i8 -> bool (VPU)
    masked = jnp.where(keep, rewards_ref[...], 0.0)        # NaN-safe zeroing
    list_ref[...] = masked                                 # fused reward_list

    # Per-tile sublane reduce (XLU slot; free under this HBM-bound regime).
    tile_sum = jnp.sum(masked, axis=1)                     # (C, 128)

    if mask_tail:
        # Grid slots past the last real tile are clamped onto the final tile
        # by the index_map; drop their duplicate contribution to the sum.
        idx = pl.program_id(0) * tiles_per_split + t
        tile_sum = tile_sum * (idx < total_tiles).astype(jnp.float32)

    contrib = tile_sum[None]                               # (1, C, 128)

    @pl.when(t == 0)
    def _init():
        psum_ref[...] = contrib

    @pl.when(t != 0)
    def _accum():
        psum_ref[...] += contrib


def _default_splits():
    """2 core-splits on v7x (2 TensorCores/chip), 1 on v5e/v6e."""
    try:
        kind = jax.devices()[0].device_kind.lower()
    except Exception:  # pragma: no cover - defensive
        return 1
    return 2 if "v7" in kind else 1


def radgraph_mean_reward(rewards, empty_mask, *, tile_rows=512, splits=None,
                         min_pallas_reports=65536):
    """Pallas-backed equivalent of RadGraph.forward's reward aggregation
    (reward_level='full').

    Args:
      rewards:    (C, N) float32 -- stand-in for compute_reward output
                  (C == 3 components for reward_level='full').
      empty_mask: (N,)   bool    -- True where the hyp or ref report is empty.
      tile_rows:  sublane rows per streamed tile (multiple of 32).  512 gives
                  a 0.75 MiB f32 block; per-step working set stays ~3 MiB, so
                  it fits v5e's 16 MiB scoped VMEM and v7x's 64 MiB physical
                  VMEM with room for double-buffering.
      splits:     leading "parallel" grid axis; None -> 2 on v7x, 1 otherwise.
      min_pallas_reports: below this N the whole workload is sub-MiB and
                  pallas_call / reshape fixed costs dominate, so it is
                  computed with fused XLA instead (crossover is chip
                  dependent; highest on v7x).

    Returns:
      mean_reward: (C,)  float32 -- per-component mean over all N reports
                   (empty reports contribute exactly 0, matching the
                   reference which appends (0,0,0) and divides by N).
      reward_list: (C, N) float32 -- per-report rewards with empties zeroed.
    """
    assert tile_rows > 0 and tile_rows % 32 == 0, "tile_rows must be a multiple of 32"
    c, n = rewards.shape
    rewards = rewards.astype(jnp.float32)
    keep_bool = jnp.logical_not(empty_mask)

    # Small batches (the module's typical use): fused-XLA path.
    if n < min_pallas_reports:
        reward_list = jnp.where(keep_bool[None, :], rewards, 0.0)
        return jnp.sum(reward_list, axis=1) * (1.0 / n), reward_list

    # Rewards are reshaped (free, contiguous) to (C, nr, 128); only a ragged N
    # (not a multiple of 128) forces a pad copy of the rewards.  Everything
    # else (last tile shorter than tile_rows, leftover grid slots) is handled
    # by partial blocks + the zero-padded keep mask, so the hot path streams
    # the rewards exactly once.
    lane_pad = (-n) % 128
    if lane_pad:
        rewards = jnp.pad(rewards, ((0, 0), (0, lane_pad)))
    n128 = n + lane_pad
    nr = n128 // 128                       # sublane rows of real data

    # Don't allocate a tile much larger than the data.
    tile_rows = min(tile_rows, ((nr + 31) // 32) * 32)

    if splits is None:
        splits = _default_splits()
    if splits > 1:
        # v7x: keep >= ~8 pipelined steps per TensorCore; prefer a smaller
        # tile over a 1-2 step pipeline that never reaches steady state.
        while tile_rows > 256 and pl.cdiv(nr, tile_rows) < 8 * splits:
            tile_rows //= 2
    total_tiles = pl.cdiv(nr, tile_rows)
    if total_tiles < 2 * splits:
        splits = 1
    nt = pl.cdiv(total_tiles, splits)      # grid steps per core split
    mask_tail = splits * nt != total_tiles

    # keep mask streamed as int8 (1 B/report), zero-padded out to the full
    # tile grid so any out-of-bounds garbage in the last (partial) rewards
    # block is zeroed by the in-kernel jnp.where.
    keep = keep_bool.astype(jnp.int8)
    keep = jnp.pad(keep, (0, total_tiles * tile_rows * 128 - n))
    k3 = keep.reshape(1, total_tiles * tile_rows, 128)
    r3 = rewards.reshape(c, nr, 128)

    if mask_tail:
        def tile_index(s, t):
            # Leftover grid slots (at most splits-1, all in the last split)
            # are clamped onto the last real tile; their psum contribution is
            # masked in-kernel and their output rewrite is idempotent.
            return jnp.minimum(s * nt + t, total_tiles - 1)
    else:
        def tile_index(s, t):
            return s * nt + t

    def data_map(s, t):
        return (0, tile_index(s, t), 0)

    kernel = functools.partial(
        _masked_reward_kernel,
        tiles_per_split=nt, total_tiles=total_tiles, mask_tail=mask_tail)

    list3, psum = pl.pallas_call(
        kernel,
        out_shape=(
            jax.ShapeDtypeStruct((c, nr, 128), jnp.float32),      # reward_list
            jax.ShapeDtypeStruct((splits, c, 128), jnp.float32),  # partial sums
        ),
        grid_spec=pltpu.PrefetchScalarGridSpec(
            num_scalar_prefetch=0,
            grid=(splits, nt),
            in_specs=[
                pl.BlockSpec((c, tile_rows, 128), data_map),
                pl.BlockSpec((1, tile_rows, 128), data_map),
            ],
            out_specs=[
                pl.BlockSpec((c, tile_rows, 128), data_map),
                pl.BlockSpec((1, c, 128), lambda s, t: (s, 0, 0)),
            ],
        ),
        compiler_params=pltpu.CompilerParams(
            dimension_semantics=("parallel", "arbitrary"),
        ),
    )(r3, k3)

    # Combine core-split / lane partials; divide by the true N (matches the
    # reference, where empty reports contribute (0,0,0) to np.mean).
    mean_reward = jnp.sum(psum, axis=(0, 2)) * (1.0 / n)
    reward_list = list3.reshape(c, n128)
    if lane_pad:
        reward_list = reward_list[:, :n]
    return mean_reward, reward_list


if __name__ == "__main__":
    key = jax.random.PRNGKey(0)
    k_rew, k_mask, k_rew2, k_mask2 = jax.random.split(key, 4)

    # --- Pallas path (streaming regime) ------------------------------------
    # 1061 sublane rows x 128 lanes = 135,808 reports (~1.6 MiB of rewards);
    # exercises multiple 512-row tiles plus a partial last tile.
    n_big = 1061 * 128
    rewards = jax.random.uniform(k_rew, (3, n_big), dtype=jnp.float32)
    empty_mask = jax.random.bernoulli(k_mask, p=0.1, shape=(n_big,))

    mean_reward, reward_list = radgraph_mean_reward(rewards, empty_mask)
    mean_reward = jax.block_until_ready(mean_reward)
    reward_list = jax.block_until_ready(reward_list)

    keep = jnp.logical_not(empty_mask)
    ref_list = jnp.where(keep[None, :], rewards, 0.0)
    ref_mean = jnp.sum(ref_list, axis=1) / n_big
    assert jnp.allclose(mean_reward, ref_mean, rtol=1e-4, atol=1e-4), (
        mean_reward, ref_mean)
    assert jnp.allclose(reward_list, ref_list, atol=1e-6)

    # --- Pallas path, ragged N (not a multiple of 128) ----------------------
    n_rag = 13000
    rewards_r = jax.random.uniform(k_rew2, (3, n_rag), dtype=jnp.float32)
    empty_r = jax.random.bernoulli(k_mask2, p=0.25, shape=(n_rag,))
    mean_r, list_r = radgraph_mean_reward(rewards_r, empty_r,
                                          min_pallas_reports=0)
    mean_r = jax.block_until_ready(mean_r)
    list_r = jax.block_until_ready(list_r)
    ref_list_r = jnp.where(jnp.logical_not(empty_r)[None, :], rewards_r, 0.0)
    ref_mean_r = jnp.sum(ref_list_r, axis=1) / n_rag
    assert jnp.allclose(mean_r, ref_mean_r, rtol=1e-4, atol=1e-4), (
        mean_r, ref_mean_r)
    assert jnp.allclose(list_r, ref_list_r, atol=1e-6)

    # --- Small batch (module's typical use): fused-XLA fallback -------------
    small_n = 8
    small_rewards = rewards[:, :small_n]
    small_mask = (jnp.zeros((small_n,), dtype=jnp.bool_)
                  .at[2].set(True).at[5].set(True))
    small_mean, small_list = radgraph_mean_reward(small_rewards, small_mask)
    small_mean = jax.block_until_ready(small_mean)
    ref_small_list = jnp.where(jnp.logical_not(small_mask)[None, :],
                               small_rewards, 0.0)
    ref_small = jnp.sum(ref_small_list, axis=1) / small_n
    assert jnp.allclose(small_mean, ref_small, atol=1e-6), (small_mean, ref_small)
    assert jnp.allclose(small_list, ref_small_list, atol=1e-6)

    print("KERNEL_OK")
</pallas_src>

<mosaic_0001>
module attributes {stable_mosaic.version = 11 : i64} {
  func.func @_masked_reward_kernel(%arg0: i32, %arg1: i32, %arg2: memref<3x512x128xf32, #tpu.memory_space<vmem>>, %arg3: memref<1x512x128xi8, #tpu.memory_space<vmem>>, %arg4: memref<3x512x128xf32, #tpu.memory_space<vmem>>, %arg5: memref<1x3x128xf32, #tpu.memory_space<vmem>>) attributes {dimension_semantics = [#tpu.dimension_semantics<parallel>, #tpu.dimension_semantics<arbitrary>], iteration_bounds = array<i64: 1, 3>, scalar_prefetch = 0 : i64, scratch_operands = 0 : i64, tpu.core_type = #tpu.core_type<tc>, window_params = [{transform_indices = @transform_0, window_bounds = array<i64: 3, 512, 128>}, {transform_indices = @transform_1, window_bounds = array<i64: 1, 512, 128>}, {transform_indices = @transform_2, window_bounds = array<i64: 3, 512, 128>}, {transform_indices = @transform_3, window_bounds = array<i64: 1, 3, 128>}]} {
    %c0 = arith.constant 0 : index
    %c0_0 = arith.constant 0 : index
    %c0_1 = arith.constant 0 : index
    %0 = vector.load %arg3[%c0, %c0_0, %c0_1] : memref<1x512x128xi8, #tpu.memory_space<vmem>>, vector<1x512x128xi8>
    %c0_i8 = arith.constant 0 : i8
    %1 = vector.broadcast %c0_i8 : i8 to vector<1x512x128xi8>
    %2 = arith.cmpi ne, %0, %1 : vector<1x512x128xi8>
    %c0_2 = arith.constant 0 : index
    %c0_3 = arith.constant 0 : index
    %c0_4 = arith.constant 0 : index
    %3 = vector.load %arg2[%c0_2, %c0_3, %c0_4] : memref<3x512x128xf32, #tpu.memory_space<vmem>>, vector<3x512x128xf32>
    %cst = arith.constant 0.000000e+00 : f32
    %4 = vector.shape_cast %2 : vector<1x512x128xi1> to vector<1x512x128xi1>
    %5 = vector.broadcast %4 : vector<1x512x128xi1> to vector<3x512x128xi1>
    %6 = vector.broadcast %cst : f32 to vector<3x512x128xf32>
    %7 = arith.select %5, %3, %6 : vector<3x512x128xi1>, vector<3x512x128xf32>
    %c0_5 = arith.constant 0 : index
    %c0_6 = arith.constant 0 : index
    %c0_7 = arith.constant 0 : index
    %8 = vector.load %arg4[%c0_5, %c0_6, %c0_7] : memref<3x512x128xf32, #tpu.memory_space<vmem>>, vector<3x512x128xf32>
    tpu.vector_store %arg4[%c0_5, %c0_6, %c0_7], %7 {strides = array<i32>} : memref<3x512x128xf32, #tpu.memory_space<vmem>>, vector<3x512x128xf32>,
    %cst_8 = arith.constant dense<0.000000e+00> : vector<3x128xf32>
    %9 = vector.multi_reduction <add>, %7, %cst_8 [1] : vector<3x512x128xf32> to vector<3x128xf32>
    %10 = vector.shape_cast %9 : vector<3x128xf32> to vector<1x3x128xf32>
    %c0_i32 = arith.constant 0 : i32
    %11 = arith.cmpi eq, %arg1, %c0_i32 : i32
    %12 = arith.extui %11 : i1 to i32
    %c0_i32_9 = arith.constant 0 : i32
    %13 = arith.cmpi ne, %12, %c0_i32_9 : i32
    scf.if %13 {
      %c0_12 = arith.constant 0 : index
      %c0_13 = arith.constant 0 : index
      %c0_14 = arith.constant 0 : index
      %17 = vector.load %arg5[%c0_12, %c0_13, %c0_14] : memref<1x3x128xf32, #tpu.memory_space<vmem>>, vector<1x3x128xf32>
      tpu.vector_store %arg5[%c0_12, %c0_13, %c0_14], %10 {strides = array<i32>} : memref<1x3x128xf32, #tpu.memory_space<vmem>>, vector<1x3x128xf32>,
    } else {
    }
    %c0_i32_10 = arith.constant 0 : i32
    %14 = arith.cmpi ne, %arg1, %c0_i32_10 : i32
    %15 = arith.extui %14 : i1 to i32
    %c0_i32_11 = arith.constant 0 : i32
    %16 = arith.cmpi ne, %15, %c0_i32_11 : i32
    scf.if %16 {
      %c0_12 = arith.constant 0 : index
      %c0_13 = arith.constant 0 : index
      %c0_14 = arith.constant 0 : index
      %17 = vector.load %arg5[%c0_12, %c0_13, %c0_14] : memref<1x3x128xf32, #tpu.memory_space<vmem>>, vector<1x3x128xf32>
      %18 = arith.addf %17, %10 : vector<1x3x128xf32>
      %c0_15 = arith.constant 0 : index
      %c0_16 = arith.constant 0 : index
      %c0_17 = arith.constant 0 : index
      %19 = vector.load %arg5[%c0_15, %c0_16, %c0_17] : memref<1x3x128xf32, #tpu.memory_space<vmem>>, vector<1x3x128xf32>
      tpu.vector_store %arg5[%c0_15, %c0_16, %c0_17], %18 {strides = array<i32>} : memref<1x3x128xf32, #tpu.memory_space<vmem>>, vector<1x3x128xf32>,
    } else {
    }
    return
  }
  func.func @transform_0(%arg0: i32, %arg1: i32) -> (i32, i32, i32) {
    %c3_i32 = arith.constant 3 : i32
    %0 = arith.muli %arg0, %c3_i32 : i32
    %1 = arith.addi %0, %arg1 : i32
    %c0_i32 = arith.constant 0 : i32
    %c0_i32_0 = arith.constant 0 : i32
    %c0_i32_1 = arith.constant 0 : i32
    return %c0_i32, %1, %c0_i32_0 : i32, i32, i32
  }
  func.func @transform_1(%arg0: i32, %arg1: i32) -> (i32, i32, i32) {
    %c3_i32 = arith.constant 3 : i32
    %0 = arith.muli %arg0, %c3_i32 : i32
    %1 = arith.addi %0, %arg1 : i32
    %c0_i32 = arith.constant 0 : i32
    %c0_i32_0 = arith.constant 0 : i32
    %c0_i32_1 = arith.constant 0 : i32
    return %c0_i32, %1, %c0_i32_0 : i32, i32, i32
  }
  func.func @transform_2(%arg0: i32, %arg1: i32) -> (i32, i32, i32) {
    %c3_i32 = arith.constant 3 : i32
    %0 = arith.muli %arg0, %c3_i32 : i32
    %1 = arith.addi %0, %arg1 : i32
    %c0_i32 = arith.constant 0 : i32
    %c0_i32_0 = arith.constant 0 : i32
    %c0_i32_1 = arith.constant 0 : i32
    return %c0_i32, %1, %c0_i32_0 : i32, i32, i32
  }
  func.func @transform_3(%arg0: i32, %arg1: i32) -> (i32, i32, i32) {
    %c0_i32 = arith.constant 0 : i32
    %c0_i32_0 = arith.constant 0 : i32
    %c0_i32_1 = arith.constant 0 : i32
    return %arg0, %c0_i32, %c0_i32_0 : i32, i32, i32
  }
}

</mosaic_0001>

<bundles_post_ra>
// kernel: tpu_custom_call.1
= control target key start
LH: loop header
LB: loop body
LE: loop exit
PB: predicated region body
PF: predicated region fallthrough
CT: control target
= control target key end

     0   :  { %9 = vsyncpa [#allocation3], 0  ;;  %s3967_s0 = inlined_call_operand.hbm [shape: f32[3,1061,128], index: 0, kind: input, shape index: {}]   ;;  %s3968_s1 = inlined_call_operand.hbm [shape: s8[1,1536,128], index: 1, kind: input, shape index: {}]   ;;  %s3969_s2 = inlined_call_operand.hbm [shape: f32[3,1061,128], index: 2, kind: output, shape index: {0}]   ;;  %s3970_s3 = inlined_call_operand.vmem [shape: f32[1,3,128], index: 3, kind: output, shape index: {1}]  }
   0x1   :  { %11 = vsyncpa [#allocation3 + $0x1], 0 }
   0x2   :  { %12 = vsyncpa [#allocation6], 0 }
   0x3   :  { %14 = vsyncpa [#allocation6 + $0x1], 0 }
   0x4   :  { %15 = vsyncpa [#allocation4], 0 }
   0x5   :  { %17 = vsyncpa [#allocation4 + $0x1], 0  ;;  %s2171_s12 = smov 0   ;;  %s2173_s13 = smov 0  }
   0x6   :  { %s2175_s14 = smov 0   ;;  %s2177_s15 = smov 0  }
   0x7   :  { %s2179_s16 = smov 0   ;;  %s2181_s17 = smov 0  }
   0x8 LB: > { %s1944_s18 = sadd.s32 4294967295, %s2134_s17   ;;  %s1945_s19 = sadd.s32 4294967294, %s2134_s17   ;;  %s2134_s17 = sphi %s2181_s17, %s23_s17   ;;  %s2130_s16 = sphi %s2179_s16, %s4628_s16   ;;  %s2126_s15 = sphi %s2177_s15, %s4627_s15   ;;  %s2122_s14 = sphi %s2175_s14, %s4626_s14   ;;  %s2118_s13 = sphi %s2173_s13, %s4625_s13   ;;  %s2114_s12 = sphi %s2171_s12, %s4624_s12  }
   0x9   : > { %s32_s20 = sadd.s32 1, %s2130_s16  ;;  %s46_s21 = sadd.s32 1, %s2122_s14 }
   0xa   : > { %p33_p0 = scmp.ge.s32.totalorder %s32_s20, 3  ;;  %p53_p1 = scmp.ne.s32.totalorder %s2122_s14, %s2118_s13 }
   0xb   : > { %p54_p2 = scmp.eq.s32.totalorder %s2134_s17, 0  ;;  %p59_p3 = scmp.ne.s32.totalorder %s2118_s13, %s2114_s12 }
   0xc   : > { %s4630_s20 = smov (%p33_p0, %s32_s20), 0  ;;  %p60_p5 = scmp.eq.s32.totalorder %s1944_s18, 0 }
   0xd   : > { %4187 = sst [smem:[#allocation15_spill]] %s4630_s20  ;;  %p2212_p4 = por %p54_p2, %p53_p1 }
   0xe   : > { %s43_s23 = ssub.s32 %s2130_s16, %s4630_s20  ;;  %p117_p6 = scmp.eq.s32.totalorder %s1944_s18, 2 }
   0xf   : > { %p44_p7 = scmp.eq.s32.totalorder %s43_s23, 0  ;;  %p2218_p8 = por %p60_p5, %p59_p3 }
  0x10   : > { %p2222_p9 = por %p117_p6, %p53_p1  ;;  %p123_p10 = scmp.eq.s32.totalorder %s1945_s19, 2 }
  0x11   : > { %s2227_s26 = scalar_select %p44_p7, %s2122_s14, %s46_s21  }
  0x12   : > { %s4190_s25 = scalar_select %p2222_p9, 1, 0 }
  0x13   : > { %4191 = sst [smem:[#allocation16_spill]] %s2227_s26  ;;  %p2229_p11 = por %p123_p10, %p59_p3 }
  0x14   : > { %p1947_p12 = scmp.ge.s32.totalorder %s2134_s17, 3 }
  0x15   : > { %s4192_s27 = scalar_select %p2229_p11, 1, 0 }
  0x16   : > { %165 = sbr.rel (%p1947_p12) target bundleno = 80 (0x50), region = 16 }
  0x1d   : > { %168 = sbr.rel (!%p2212_p4) target bundleno = 54 (0x36), region = 20 }
  0x24   : > { %s169_s28 = sand.u32 1, %s2122_s14   ;;  %s1948_s29 = sshll.u32 %s2130_s16, 6 }
  0x25   : > { %s1975_s30 = smul.u32 1536, %s169_s28  ;;  %s177_s4 = ssub.s32 133, %s1948_s29 }
  0x26   : > { %p178_p13 = scmp.lt.s32.totalorder %s177_s4, 64  ;;  %s170_s7 = scalar_lea.sflag [#allocation3], %s169_s28 }
  0x27   : > { %s173_s8 = scalar_lea.vmem [#allocation2], %s1975_s30 }
  0x28   : > { %s4632_s4 = smov (!%p178_p13, %s177_s4), 64 }
  0x29   : > { %s180_s5 = smul.u32 384, %s4632_s4 }
  0x2b   : > { %s182_s6 = ssub.s32 24576, %s180_s5 }
  0x2c   : > { %183 = vsyncadd %s170_s7, %s182_s6  ;;  %p1949_p0 = scmp.ne.s32.totalorder %s180_s5, 0  ;;  %s1972_s9 = sshll.u32 %s2130_s16, 13 }
  0x2d   : > { %s186_s18 = scalar_lea.hbm %s3967_s0, %s1972_s9  ;;  %s193_s19 = sld [smem:[#allocation0]]  }
  0x2e   : > { %s201_s21 = sshll.u32 %s173_s8, 4  ;;  %s2136_s23 = smov 17024   ;;  %s202_s21 = int_to_ptr.vmem [resolvable:$true] %s201_s21 }
  0x2f   : > { %208 = sst [smem:[#allocation9]] %s2136_s23  ;;  %s2137_s29 = smov 8192  }
  0x30   : > { %212 = sst [smem:[#allocation9 + $0x2]] %s4632_s4  ;;  %s2138_s20 = smov 128  }
  0x31   : > { %210 = sst [smem:[#allocation9 + $0x1]] %s2137_s29  ;;  %s2139_s6 = smov 8  }
  0x32   : > { %214 = sst [smem:[#allocation9 + $0x3]] %s2138_s20  ;;  %s2140_s26 = smov [#allocation8]  }
  0x33   : > { %s1953_s28 = sshll.u32 %s193_s19, 26  ;;  %216 = sst [smem:[#allocation9 + $0x4]] %s2138_s20 }
  0x34   : > { %s1954_s30 = sadd.s32 134217728, %s1953_s28  ;;  %218 = sst [smem:[#allocation9 + $0x5]] %s2139_s6 }
  0x35   : > { %220 = dma.general (%p1949_p0), %s186_s18, %s180_s5, %s202_s21, %s170_s7, %s2140_s26, [#allocation9], %s1954_s30, 0  }
  0x36 PF: > { %s224_s8 = sand.u32 1, %s2122_s14   ;;  %s1973_s9 = sshll.u32 %s2130_s16, 11 }
  0x37   : > { %s1956_s10 = sshll.u32 %s224_s8, 7  ;;  %s2248_s23 = scalar_lea.hbm %s3968_s1, %s1973_s9 }
  0x38   : > { %s228_s20 = scalar_lea.vmem [#allocation5], %s1956_s10  ;;  %s2252_s26 = scalar_lea.sflag [#allocation6], %s224_s8 }
  0x39   : > { %s237_s19 = sshll.u32 %s228_s20, 4  ;;  %s2048_s5 = scalar_lea.hbm %s2248_s23, 2048  ;;  %s2250_s19 = int_to_ptr.vmem [resolvable:$true] %s237_s19 }
  0x3a   : > { %p2049_p1 = scmp.ne.s32.totalorder %s2248_s23, %s2048_s5  ;;  %s2052_s21 = scalar_lea.hbm %s3968_s1, 6144 }
  0x3b   : > { %p2053_p5 = scmp.lt.u32.totalorder %s2248_s23, %s3968_s1  ;;  %p2054_p6 = scmp.lt.u32.totalorder %s2052_s21, %s2048_s5 }
  0x3c   : > { %p2050_p2 = pnand %p2049_p1, %p2212_p4  ;;  %p2056_p10 = scmp.lt.u32.totalorder %s2048_s5, %s2248_s23 }
  0x3d   : > { %p2055_p7 = por %p2054_p6, %p2053_p5 }
  0x3e   : > { %p2051_p3 = pneg %p2050_p2 }
  0x3f   : > { %p2057_p12 = por %p2056_p10, %p2055_p7 }
  0x41   : > { %p2058_p13 = pnand %p2057_p12, %p2051_p3 }
  0x43   : > { %2061 = shalt.err (!%p2058_p13)
}
  0x44   : > { %s2062_s30 = scalar_lea.vmem %s2250_s19, 2048  ;;  %s2141_s6 = smov [#allocation5]  }
  0x45   : > { %p2063_p0 = scmp.ne.s32.totalorder %s2250_s19, %s2062_s30  ;;  %s2066_s8 = sshll.u32 %s2141_s6, 4  ;;  %s2067_s8 = int_to_ptr.vmem [resolvable:$false] %s2066_s8 }
  0x46   : > { %s2068_s9 = scalar_lea.vmem %s2067_s8, 4096  ;;  %p2069_p11 = scmp.lt.s32.totalorder %s2250_s19, %s2067_s8 }
  0x47   : > { %p2064_p1 = pnand %p2063_p0, %p2212_p4  ;;  %p2070_p9 = scmp.lt.s32.totalorder %s2068_s9, %s2062_s30 }
  0x49   : > { %p2065_p2 = pneg %p2064_p1  ;;  %p2071_p5 = por %p2070_p9, %p2069_p11 }
  0x4b   : > { %p2072_p6 = pnand %p2071_p5, %p2065_p2 }
  0x4d   : > { %2075 = shalt.err (!%p2072_p6)
}
  0x4e   : > { %s2142_s10 = smov 128   ;;  %s2143_s4 = smov 8  }
  0x4f   : > { %1977 = dma.hbm_to_vmem [thread:$0]  (%p2212_p4), %s2248_s23, 2048, %s2250_s19, %s2252_s26, %s2142_s10, %s2142_s10, %s2143_s4  }
  0x50 PF: > { %p1959_p3 = scmp.ge.s32.totalorder %s2134_s17, 1  ;;  %p245_p7 = scmp.lt.s32.totalorder %s2134_s17, 4 }
  0x52   : > { %p246_p10 = pnand %p1959_p3, %p245_p7 }
  0x54   : > { %249 = sbr.rel (%p246_p10) target bundleno = 527 (0x20f), region = 28 }
  0x5b   : > { %s2279_s11 = sand.u32 1, %s2118_s13  }
  0x5c   : > { %s1976_s20 = smul.u32 1536, %s2279_s11  ;;  %s252_s5 = scalar_lea.sflag [#allocation3], %s2279_s11 }
  0x5e   : > { %s2285_s7 = scalar_lea.vmem [#allocation2], %s1976_s20 }
  0x5f   : > { %2101 = dma.done.wait (%p2218_p8), %s252_s5, 24576  }
  0x60   : > { %2103 = vsyncadd (%p2218_p8), %s252_s5, 4294942720  ;;  %s1960_s22 = sshll.u32 %s2279_s11, 7  ;;  %s261_s23 = scalar_lea.sflag [#allocation6], %s2279_s11 }
  0x61   : > { %s2293_s19 = scalar_lea.vmem [#allocation5], %s1960_s22 }
  0x62   : > { %2105 = dma.done.wait (%p2218_p8), %s261_s23, 2048  }
  0x63   : > { %2107 = vsyncadd (%p2218_p8), %s261_s23, 4294965248  ;;  %v319_v0 = vld [vmem:[%s2293_s19] sm:$0xff]  ;;  %v320_v1 = vld [vmem:[%s2293_s19 + $0x8] sm:$0xff]  ;;  %v4038_v2 = vmov 0   ;;  %v4193_v41 = vmov 0  ;;  %v4196_v42 = vmov 0 }
  0x64   : > { %vm335_vm0 = vnez %v319_v0  ;;  %vm336_vm1 = vnez %v320_v1  ;;  %v321_v8 = vld [vmem:[%s2293_s19 + $0x10] sm:$0xff]  ;;  %v351_v30 = vld [vmem:[%s2285_s7] sm:$0xff]  ;;  %v352_v32 = vld [vmem:[%s2285_s7 + $0x8] sm:$0xff]  ;;  %v4199_v43 = vmov 0  ;;  %v4202_v48 = vmov 0  ;;  %s2337_s24 = scalar_lea.vmem [#allocation7], %s1976_s20 }
  0x65   : > { %v543_v3 = vsel %vm335_vm0, 16843009, %v4038_v2  ;;  %v544_v9 = vsel %vm336_vm1, 16843009, %v4038_v2  ;;  %vm337_vm2 = vnez %v321_v8  ;;  %v353_v34 = vld [vmem:[%s2285_s7 + $0x10] sm:$0xff]  ;;  %v354_v37 = vld [vmem:[%s2285_s7 + $0x18] sm:$0xff] }
  0x66   : > { %v559_v4 = vunpack.c.0.s8 %v543_v3  ;;  %v560_v5 = vunpack.c.1.s8 %v543_v3  ;;  %v561_v6 = vunpack.c.2.s8 %v543_v3  ;;  %v562_v7 = vunpack.c.3.s8 %v543_v3  ;;  %v355_v51 = vld [vmem:[%s2285_s7 + $0x20] sm:$0xff]  ;;  %v356_v58 = vld [vmem:[%s2285_s7 + $0x28] sm:$0xff]  ;;  %v357_v62 = vld [vmem:[%s2285_s7 + $0x30] sm:$0xff]  ;;  %p1961_p4 = scmp.ne.s32.totalorder %s2126_s15, 0 }
  0x67   : > { %v563_v14 = vunpack.c.0.s8 %v544_v9  ;;  %v564_v15 = vunpack.c.1.s8 %v544_v9  ;;  %v565_v16 = vunpack.c.2.s8 %v544_v9  ;;  %v566_v17 = vunpack.c.3.s8 %v544_v9  ;;  %v358_v9 = vld [vmem:[%s2285_s7 + $0x38] sm:$0xff] }
  0x68   : > { %v623_v10 = vpack.c.b16 %v559_v4, %v559_v4  ;;  %v625_v11 = vpack.c.b16 %v560_v5, %v560_v5  ;;  %v627_v12 = vpack.c.b16 %v561_v6, %v561_v6  ;;  %v629_v13 = vpack.c.b16 %v562_v7, %v562_v7  ;;  %v322_v6 = vld [vmem:[%s2293_s19 + $0x18] sm:$0xff] }
  0x69   : > { %v631_v22 = vpack.c.b16 %v563_v14, %v563_v14  ;;  %v633_v23 = vpack.c.b16 %v564_v15, %v564_v15  ;;  %v635_v24 = vpack.c.b16 %v565_v16, %v565_v16  ;;  %v637_v25 = vpack.c.b16 %v566_v17, %v566_v17  ;;  %v2376_v16 = vld [vmem:[%s2293_s19 + $0x20] sm:$0xff] }
  0x6a   : > { %v624_v18 = vpack.c.b8 %v623_v10, %v623_v10  ;;  %v626_v19 = vpack.c.b8 %v625_v11, %v625_v11  ;;  %v628_v20 = vpack.c.b8 %v627_v12, %v627_v12  ;;  %v630_v21 = vpack.c.b8 %v629_v13, %v629_v13 }
  0x6b   : > { %v632_v29 = vpack.c.b8 %v631_v22, %v631_v22  ;;  %v634_v39 = vpack.c.b8 %v633_v23, %v633_v23  ;;  %v636_v40 = vpack.c.b8 %v635_v24, %v635_v24  ;;  %v638_v54 = vpack.c.b8 %v637_v25, %v637_v25 }
  0x6c   : > { %vm751_vm3 = vnez %v624_v18  ;;  %vm752_vm4 = vnez %v626_v19  ;;  %vm753_vm5 = vnez %v628_v20  ;;  %vm754_vm6 = vnez %v630_v21 }
  0x6d   : > { %v815_v26 = vsel %vm751_vm3, 16843009, %v4038_v2  ;;  %v816_v27 = vsel %vm752_vm4, 16843009, %v4038_v2  ;;  %v817_v28 = vsel %vm753_vm5, 16843009, %v4038_v2  ;;  %vm755_vm7 = vnez %v632_v29 }
  0x6e   : > { %v879_v31 = vunpack.c.0.s8 %v815_v26  ;;  %v880_v33 = vunpack.c.0.s8 %v816_v27  ;;  %v881_v35 = vunpack.c.0.s8 %v817_v28  ;;  %v818_v36 = vsel %vm754_vm6, 16843009, %v4038_v2  ;;  %v359_v29 = vld [vmem:[%s2285_s7 + $0x40] sm:$0xff] }
  0x6f   : > { %v882_v38 = vunpack.c.0.s8 %v818_v36  ;;  %v819_v44 = vsel %vm755_vm7, 16843009, %v4038_v2  ;;  %vm756_vm12 = vnez %v634_v39  ;;  %vm757_vm13 = vnez %v636_v40 }
  0x70   : > { %vm2312_vm8 = vcmp.ne.s32.totalorder %v879_v31, 0  ;;  %vm2316_vm9 = vcmp.ne.s32.totalorder %v880_v33, 0  ;;  %vm2320_vm10 = vcmp.ne.s32.totalorder %v881_v35, 0  ;;  %v883_v52 = vunpack.c.0.s8 %v819_v44  ;;  %v360_v35 = vld [vmem:[%s2285_s7 + $0x48] sm:$0xff] }
  0x71   : > { %v4194_v41 = vsel %vm2312_vm8, 4294967295, %v4193_v41  ;;  %v4197_v42 = vsel %vm2316_vm9, 4294967295, %v4196_v42  ;;  %v4200_v43 = vsel %vm2320_vm10, 4294967295, %v4199_v43  ;;  %v1135_v45 = vsel %vm2312_vm8, %v351_v30, 0.0 }
  0x72   : > { %4195 = vst [vmem:[#allocation17_spill] sm:$0xff] %v4194_v41  ;;  %4198 = vst [vmem:[#allocation18_spill] sm:$0xff] %v4197_v42  ;;  %v1136_v46 = vsel %vm2316_vm9, %v352_v32, 0.0  ;;  %v1137_v47 = vsel %vm2320_vm10, %v353_v34, 0.0  ;;  %vm2331_vm11 = vcmp.ne.s32.totalorder %v882_v38, 0  ;;  %vm2349_vm14 = vcmp.ne.s32.totalorder %v883_v52, 0 }
  0x73   : > { %4201 = vst [vmem:[#allocation19_spill] sm:$0xff] %v4200_v43  ;;  %v4203_v48 = vsel %vm2331_vm11, 4294967295, %v4202_v48  ;;  %1327 = vst [vmem:[%s2337_s24] sm:$0xff] %v1135_v45  ;;  %v1519_v49 = vadd.f32 %v1136_v46, %v1135_v45  ;;  %v1138_v50 = vsel %vm2331_vm11, %v354_v37, 0.0  ;;  %v820_v53 = vsel %vm756_vm12, 16843009, %v4038_v2  ;;  %v362_v52 = vld [vmem:[%s2285_s7 + $0x58] sm:$0xff] }
  0x74   : > { %4204 = vst [vmem:[#allocation20_spill] sm:$0xff] %v4203_v48  ;;  %1328 = vst [vmem:[%s2337_s24 + $0x8] sm:$0xff] %v1136_v46  ;;  %v545_v55 = vsel %vm337_vm2, 16843009, %v4038_v2  ;;  %v4205_v57 = vmov 0  ;;  %v884_v59 = vunpack.c.0.s8 %v820_v53  ;;  %v1139_v61 = vsel %vm2349_vm14, %v355_v51, 0.0 }
  0x75   : > { %1329 = vst [vmem:[%s2337_s24 + $0x10] sm:$0xff] %v1137_v47  ;;  %1330 = vst [vmem:[%s2337_s24 + $0x18] sm:$0xff] %v1138_v50  ;;  %v1520_v56 = vadd.f32 %v1519_v49, %v1137_v47  ;;  %v4206_v57 = vsel %vm2349_vm14, 4294967295, %v4205_v57  ;;  %v821_v60 = vsel %vm757_vm13, 16843009, %v4038_v2  ;;  %vm758_vm15 = vnez %v638_v54  ;;  %v361_v46 = vld [vmem:[%s2285_s7 + $0x50] sm:$0xff] }
  0x76   : > { %4207 = vst [vmem:[#allocation21_spill] sm:$0xff] %v4206_v57  ;;  %v885_v63 = vunpack.c.0.s8 %v821_v60  ;;  %v567_v0 = vunpack.c.0.s8 %v545_v55  ;;  %1331 = vst [vmem:[%s2337_s24 + $0x20] sm:$0xff] %v1139_v61  ;;  %vm2359_vm0 = vcmp.ne.s32.totalorder %v884_v59, 0  ;;  %v4208_v3 = vmov 0  ;;  %v414_v43 = vld [vmem:[%s2285_s7 + $0x1f8] sm:$0xff]  ;;  %v427_v48 = vld [vmem:[%s2285_s7 + $0x260] sm:$0xff] }
  0x77   : > { %v1521_v1 = vadd.f32 %v1520_v56, %v1138_v50  ;;  %v4209_v3 = vsel %vm2359_vm0, 4294967295, %v4208_v3  ;;  %v822_v4 = vsel %vm758_vm15, 16843009, %v4038_v2  ;;  %v568_v5 = vunpack.c.1.s8 %v545_v55  ;;  %v434_v57 = vld [vmem:[%s2285_s7 + $0x298] sm:$0xff] }
  0x78   : > { %4210 = vst [vmem:[#allocation22_spill] sm:$0xff] %v4209_v3  ;;  %v1140_v7 = vsel %vm2359_vm0, %v356_v58, 0.0  ;;  %vm2367_vm1 = vcmp.ne.s32.totalorder %v885_v63, 0  ;;  %v4211_v8 = vmov 0  ;;  %v886_v10 = vunpack.c.0.s8 %v822_v4  ;;  %v433_v3 = vld [vmem:[%s2285_s7 + $0x290] sm:$0xff] }
  0x79   : > { %v4212_v8 = vsel %vm2367_vm1, 4294967295, %v4211_v8  ;;  %v639_v11 = vpack.c.b16 %v567_v0, %v567_v0  ;;  %v1522_v12 = vadd.f32 %v1521_v1, %v1139_v61  ;;  %1332 = vst [vmem:[%s2337_s24 + $0x28] sm:$0xff] %v1140_v7  ;;  %v1141_v13 = vsel %vm2367_vm1, %v357_v62, 0.0 }
  0x7a   : > { %4213 = vst [vmem:[#allocation23_spill] sm:$0xff] %v4212_v8  ;;  %v641_v14 = vpack.c.b16 %v568_v5, %v568_v5  ;;  %v569_v15 = vunpack.c.2.s8 %v545_v55  ;;  %1333 = vst [vmem:[%s2337_s24 + $0x30] sm:$0xff] %v1141_v13  ;;  %vm2379_vm2 = vcmp.ne.s32.totalorder %v886_v10, 0  ;;  %v4214_v17 = vmov 0 }
  0x7b   : > { %v4215_v17 = vsel %vm2379_vm2, 4294967295, %v4214_v17  ;;  %v640_v18 = vpack.c.b8 %v639_v11, %v639_v11  ;;  %v570_v19 = vunpack.c.3.s8 %v545_v55  ;;  %vm338_vm3 = vnez %v322_v6  ;;  %v363_v6 = vld [vmem:[%s2285_s7 + $0x60] sm:$0xff] }
  0x7c   : > { %4216 = vst [vmem:[#allocation24_spill] sm:$0xff] %v4215_v17  ;;  %v1523_v20 = vadd.f32 %v1522_v12, %v1140_v7  ;;  %v1142_v21 = vsel %vm2379_vm2, %v358_v9, 0.0  ;;  %v642_v22 = vpack.c.b8 %v641_v14, %v641_v14  ;;  %v643_v23 = vpack.c.b16 %v569_v15, %v569_v15 }
  0x7d   : > { %1334 = vst [vmem:[%s2337_s24 + $0x38] sm:$0xff] %v1142_v21  ;;  %vm759_vm4 = vnez %v640_v18  ;;  %v645_v24 = vpack.c.b16 %v570_v19, %v570_v19  ;;  %v546_v25 = vsel %vm338_vm3, 16843009, %v4038_v2  ;;  %vm339_vm5 = vnez %v2376_v16 }
  0x7e   : > { %v1524_v26 = vadd.f32 %v1523_v20, %v1141_v13  ;;  %v823_v27 = vsel %vm759_vm4, 16843009, %v4038_v2  ;;  %vm760_vm6 = vnez %v642_v22  ;;  %v644_v28 = vpack.c.b8 %v643_v23, %v643_v23 }
  0x7f   : > { %v887_v30 = vunpack.c.0.s8 %v823_v27  ;;  %v824_v31 = vsel %vm760_vm6, 16843009, %v4038_v2  ;;  %v646_v32 = vpack.c.b8 %v645_v24, %v645_v24  ;;  %v571_v33 = vunpack.c.0.s8 %v546_v25  ;;  %v365_v27 = vld [vmem:[%s2285_s7 + $0x70] sm:$0xff] }
  0x80   : > { %v1525_v34 = vadd.f32 %v1524_v26, %v1142_v21  ;;  %v888_v36 = vunpack.c.0.s8 %v824_v31  ;;  %vm761_vm7 = vnez %v644_v28  ;;  %v572_v37 = vunpack.c.1.s8 %v546_v25  ;;  %v364_v21 = vld [vmem:[%s2285_s7 + $0x68] sm:$0xff] }
  0x81   : > { %vm2392_vm12 = vcmp.ne.s32.totalorder %v887_v30, 0  ;;  %v4217_v38 = vmov 0  ;;  %v825_v39 = vsel %vm761_vm7, 16843009, %v4038_v2  ;;  %vm762_vm13 = vnez %v646_v32  ;;  %v366_v32 = vld [vmem:[%s2285_s7 + $0x78] sm:$0xff] }
  0x82   : > { %v4218_v38 = vsel %vm2392_vm12, 4294967295, %v4217_v38  ;;  %v647_v40 = vpack.c.b16 %v571_v33, %v571_v33  ;;  %v1143_v44 = vsel %vm2392_vm12, %v359_v29, 0.0  ;;  %vm2399_vm15 = vcmp.ne.s32.totalorder %v888_v36, 0 }
  0x83   : > { %4219 = vst [vmem:[#allocation25_spill] sm:$0xff] %v4218_v38  ;;  %v4220_v45 = vmov 0  ;;  %v889_v47 = vunpack.c.0.s8 %v825_v39  ;;  %v826_v49 = vsel %vm762_vm13, 16843009, %v4038_v2  ;;  %1335 = vst [vmem:[%s2337_s24 + $0x40] sm:$0xff] %v1143_v44  ;;  %v1526_v50 = vadd.f32 %v1525_v34, %v1143_v44  ;;  %v438_v38 = vld [vmem:[%s2285_s7 + $0x2b8] sm:$0xff] }
  0x84   : > { %v4221_v45 = vsel %vm2399_vm15, 4294967295, %v4220_v45  ;;  %v1144_v51 = vsel %vm2399_vm15, %v360_v35, 0.0  ;;  %v890_v53 = vunpack.c.0.s8 %v826_v49  ;;  %v648_v54 = vpack.c.b8 %v647_v40, %v647_v40  ;;  %v324_v40 = vld [vmem:[%s2293_s19 + $0x28] sm:$0xff]  ;;  %v325_v49 = vld [vmem:[%s2293_s19 + $0x30] sm:$0xff] }
  0x85   : > { %4222 = vst [vmem:[#allocation26_spill] sm:$0xff] %v4221_v45  ;;  %1336 = vst [vmem:[%s2337_s24 + $0x48] sm:$0xff] %v1144_v51  ;;  %vm2410_vm3 = vcmp.ne.s32.totalorder %v889_v47, 0  ;;  %v4223_v55 = vmov 0  ;;  %v649_v56 = vpack.c.b16 %v572_v37, %v572_v37  ;;  %v573_v58 = vunpack.c.2.s8 %v546_v25  ;;  %v442_v45 = vld [vmem:[%s2285_s7 + $0x2d8] sm:$0xff] }
  0x86   : > { %v4224_v55 = vsel %vm2410_vm3, 4294967295, %v4223_v55  ;;  %v574_v59 = vunpack.c.3.s8 %v546_v25  ;;  %v1527_v60 = vadd.f32 %v1526_v50, %v1144_v51  ;;  %v1145_v61 = vsel %vm2410_vm3, %v361_v46, 0.0 }
  0x87   : > { %4225 = vst [vmem:[#allocation27_spill] sm:$0xff] %v4224_v55  ;;  %vm2416_vm4 = vcmp.ne.s32.totalorder %v890_v53, 0  ;;  %v4226_v62 = vmov 0  ;;  %vm763_vm6 = vnez %v648_v54  ;;  %1337 = vst [vmem:[%s2337_s24 + $0x50] sm:$0xff] %v1145_v61  ;;  %v650_v1 = vpack.c.b8 %v649_v56, %v649_v56  ;;  %v368_v56 = vld [vmem:[%s2285_s7 + $0x88] sm:$0xff]  ;;  %v441_v55 = vld [vmem:[%s2285_s7 + $0x2d0] sm:$0xff] }
  0x88   : > { %v4227_v62 = vsel %vm2416_vm4, 4294967295, %v4226_v62  ;;  %v1146_v63 = vsel %vm2416_vm4, %v362_v52, 0.0  ;;  %v827_v0 = vsel %vm763_vm6, 16843009, %v4038_v2  ;;  %v651_v4 = vpack.c.b16 %v573_v58, %v573_v58  ;;  %v367_v52 = vld [vmem:[%s2285_s7 + $0x80] sm:$0xff] }
  0x89   : > { %v1528_v5 = vadd.f32 %v1527_v60, %v1145_v61  ;;  %1338 = vst [vmem:[%s2337_s24 + $0x58] sm:$0xff] %v1146_v63  ;;  %v891_v7 = vunpack.c.0.s8 %v827_v0  ;;  %v653_v9 = vpack.c.b16 %v574_v59, %v574_v59  ;;  %v547_v10 = vsel %vm339_vm5, 16843009, %v4038_v2 }
  0x8a   : > { %vm764_vm7 = vnez %v650_v1  ;;  %v652_v11 = vpack.c.b8 %v651_v4, %v651_v4  ;;  %v575_v12 = vunpack.c.0.s8 %v547_v10  ;;  %v576_v13 = vunpack.c.1.s8 %v547_v10 }
  0x8b   : > { %v1529_v14 = vadd.f32 %v1528_v5, %v1146_v63  ;;  %vm2429_vm13 = vcmp.ne.s32.totalorder %v891_v7, 0  ;;  %v4228_v15 = vmov 0  ;;  %v828_v18 = vsel %vm764_vm7, 16843009, %v4038_v2 }
  0x8c   : > { %v4229_v15 = vsel %vm2429_vm13, 4294967295, %v4228_v15  ;;  %v654_v19 = vpack.c.b8 %v653_v9, %v653_v9  ;;  %v1147_v20 = vsel %vm2429_vm13, %v363_v6, 0.0  ;;  %v892_v16 = vunpack.c.0.s8 %v828_v18 }
  0x8d   : > { %vm765_vm5 = vnez %v652_v11  ;;  %v655_v22 = vpack.c.b16 %v575_v12, %v575_v12  ;;  %1339 = vst [vmem:[%s2337_s24 + $0x60] sm:$0xff] %v1147_v20  ;;  %v1530_v23 = vadd.f32 %v1529_v14, %v1147_v20  ;;  %v657_v25 = vpack.c.b16 %v576_v13, %v576_v13  ;;  %v2485_v14 = vld [vmem:[%s2293_s19 + $0x38] sm:$0xff] }
  0x8e   : > { %v829_v24 = vsel %vm765_vm5, 16843009, %v4038_v2  ;;  %vm766_vm6 = vnez %v654_v19  ;;  %vm2439_vm4 = vcmp.ne.s32.totalorder %v892_v16, 0  ;;  %v4230_v26 = vmov 0  ;;  %v369_v16 = vld [vmem:[%s2285_s7 + $0x90] sm:$0xff] }
  0x8f   : > { %v4231_v26 = vsel %vm2439_vm4, 4294967295, %v4230_v26  ;;  %v893_v28 = vunpack.c.0.s8 %v829_v24  ;;  %v830_v29 = vsel %vm766_vm6, 16843009, %v4038_v2  ;;  %v656_v30 = vpack.c.b8 %v655_v22, %v655_v22 }
  0x90   : > { %4232 = vst [vmem:[#allocation28_spill] sm:$0xff] %v4231_v26  ;;  %v1148_v31 = vsel %vm2439_vm4, %v364_v21, 0.0  ;;  %v894_v33 = vunpack.c.0.s8 %v830_v29  ;;  %v658_v34 = vpack.c.b8 %v657_v25, %v657_v25  ;;  %v577_v35 = vunpack.c.2.s8 %v547_v10 }
  0x91   : > { %1340 = vst [vmem:[%s2337_s24 + $0x68] sm:$0xff] %v1148_v31  ;;  %v1531_v36 = vadd.f32 %v1530_v23, %v1148_v31  ;;  %vm2449_vm7 = vcmp.ne.s32.totalorder %v893_v28, 0  ;;  %v4233_v37 = vmov 0  ;;  %vm767_vm5 = vnez %v656_v30  ;;  %v370_v23 = vld [vmem:[%s2285_s7 + $0x98] sm:$0xff] }
  0x92   : > { %v4234_v37 = vsel %vm2449_vm7, 4294967295, %v4233_v37  ;;  %v578_v39 = vunpack.c.3.s8 %v547_v10  ;;  %v1149_v44 = vsel %vm2449_vm7, %v365_v27, 0.0  ;;  %vm2456_vm6 = vcmp.ne.s32.totalorder %v894_v33, 0 }
  0x93   : > { %4235 = vst [vmem:[#allocation29_spill] sm:$0xff] %v4234_v37  ;;  %v4236_v46 = vmov 0  ;;  %v831_v47 = vsel %vm767_vm5, 16843009, %v4038_v2  ;;  %vm768_vm4 = vnez %v658_v34  ;;  %1341 = vst [vmem:[%s2337_s24 + $0x70] sm:$0xff] %v1149_v44  ;;  %v1532_v50 = vadd.f32 %v1531_v36, %v1149_v44 }
  0x94   : > { %v4237_v46 = vsel %vm2456_vm6, 4294967295, %v4236_v46  ;;  %v1150_v51 = vsel %vm2456_vm6, %v366_v32, 0.0  ;;  %v895_v53 = vunpack.c.0.s8 %v831_v47  ;;  %v832_v54 = vsel %vm768_vm4, 16843009, %v4038_v2  ;;  %v371_v47 = vld [vmem:[%s2285_s7 + $0xa0] sm:$0xff] }
  0x95   : > { %4238 = vst [vmem:[#allocation30_spill] sm:$0xff] %v4237_v46  ;;  %1342 = vst [vmem:[%s2337_s24 + $0x78] sm:$0xff] %v1150_v51  ;;  %v896_v58 = vunpack.c.0.s8 %v832_v54  ;;  %v659_v59 = vpack.c.b16 %v577_v35, %v577_v35  ;;  %v661_v60 = vpack.c.b16 %v578_v39, %v578_v39  ;;  %vm340_vm7 = vnez %v324_v40 }
  0x96   : > { %v1533_v61 = vadd.f32 %v1532_v50, %v1150_v51  ;;  %vm2469_vm5 = vcmp.ne.s32.totalorder %v895_v53, 0  ;;  %v4239_v63 = vmov 0  ;;  %v548_v0 = vsel %vm340_vm7, 16843009, %v4038_v2  ;;  %v372_v53 = vld [vmem:[%s2285_s7 + $0xa8] sm:$0xff] }
  0x97   : > { %v4240_v63 = vsel %vm2469_vm5, 4294967295, %v4239_v63  ;;  %v1151_v1 = vsel %vm2469_vm5, %v367_v52, 0.0  ;;  %vm2476_vm4 = vcmp.ne.s32.totalorder %v896_v58, 0  ;;  %v4242_v4 = vmov 0 }
  0x98   : > { %4241 = vst [vmem:[#allocation31_spill] sm:$0xff] %v4240_v63  ;;  %v4243_v4 = vsel %vm2476_vm4, 4294967295, %v4242_v4  ;;  %v660_v5 = vpack.c.b8 %v659_v59, %v659_v59  ;;  %v662_v6 = vpack.c.b8 %v661_v60, %v661_v60  ;;  %1343 = vst [vmem:[%s2337_s24 + $0x80] sm:$0xff] %v1151_v1  ;;  %v1534_v7 = vadd.f32 %v1533_v61, %v1151_v1  ;;  %v374_v61 = vld [vmem:[%s2285_s7 + $0xb8] sm:$0xff] }
  0x99   : > { %v1152_v9 = vsel %vm2476_vm4, %v368_v56, 0.0  ;;  %v579_v10 = vunpack.c.0.s8 %v548_v0  ;;  %v580_v11 = vunpack.c.1.s8 %v548_v0  ;;  %v581_v12 = vunpack.c.2.s8 %v548_v0  ;;  %v373_v56 = vld [vmem:[%s2285_s7 + $0xb0] sm:$0xff] }
  0x9a   : > { %1344 = vst [vmem:[%s2337_s24 + $0x88] sm:$0xff] %v1152_v9  ;;  %vm769_vm7 = vnez %v660_v5  ;;  %vm770_vm6 = vnez %v662_v6  ;;  %v582_v13 = vunpack.c.3.s8 %v548_v0  ;;  %v1535_v18 = vadd.f32 %v1534_v7, %v1152_v9 }
  0x9b   : > { %v833_v19 = vsel %vm769_vm7, 16843009, %v4038_v2  ;;  %v834_v20 = vsel %vm770_vm6, 16843009, %v4038_v2  ;;  %v663_v21 = vpack.c.b16 %v579_v10, %v579_v10  ;;  %v665_v25 = vpack.c.b16 %v580_v11, %v580_v11  ;;  %v2531_v11 = vld [vmem:[%s2293_s19 + $0x40] sm:$0xff] }
  0x9c   : > { %v897_v22 = vunpack.c.0.s8 %v833_v19  ;;  %v898_v24 = vunpack.c.0.s8 %v834_v20  ;;  %v667_v27 = vpack.c.b16 %v581_v12, %v581_v12  ;;  %v669_v29 = vpack.c.b16 %v582_v13, %v582_v13 }
  0x9d   : > { %v664_v28 = vpack.c.b8 %v663_v21, %v663_v21  ;;  %vm4244_vm4 = vnez %v325_v49  ;;  %v4245_v31 = vmov 0  ;;  %v4247_v32 = vmov 0 }
  0x9e   : > { %v549_v30 = vsel %vm4244_vm4, 16843009, %v4038_v2  ;;  %vm2494_vm7 = vcmp.ne.s32.totalorder %v897_v22, 0  ;;  %vm2498_vm6 = vcmp.ne.s32.totalorder %v898_v24, 0  ;;  %v666_v33 = vpack.c.b8 %v665_v25, %v665_v25 }
  0x9f   : > { %v4246_v31 = vsel %vm2494_vm7, 4294967295, %v4245_v31  ;;  %v4248_v32 = vsel %vm2498_vm6, 4294967295, %v4247_v32  ;;  %v668_v34 = vpack.c.b8 %v667_v27, %v667_v27  ;;  %v1153_v35 = vsel %vm2494_vm7, %v369_v16, 0.0 }
  0xa0   : > { %4249 = vst [vmem:[#allocation32_spill] sm:$0xff] %v4248_v32  ;;  %v1154_v36 = vsel %vm2498_vm6, %v370_v23, 0.0  ;;  %vm771_vm4 = vnez %v664_v28  ;;  %v670_v39 = vpack.c.b8 %v669_v29, %v669_v29  ;;  %1345 = vst [vmem:[%s2337_s24 + $0x90] sm:$0xff] %v1153_v35  ;;  %v1536_v40 = vadd.f32 %v1535_v18, %v1153_v35 }
  0xa1   : > { %1346 = vst [vmem:[%s2337_s24 + $0x98] sm:$0xff] %v1154_v36  ;;  %v835_v44 = vsel %vm771_vm4, 16843009, %v4038_v2  ;;  %vm772_vm5 = vnez %v666_v33  ;;  %vm773_vm13 = vnez %v668_v34  ;;  %v4250_v60 = vmov 0 }
  0xa2   : > { %v899_v49 = vunpack.c.0.s8 %v835_v44  ;;  %v836_v50 = vsel %vm772_vm5, 16843009, %v4038_v2  ;;  %v837_v51 = vsel %vm773_vm13, 16843009, %v4038_v2  ;;  %vm774_vm7 = vnez %v670_v39 }
  0xa3   : > { %v1537_v52 = vadd.f32 %v1536_v40, %v1154_v36  ;;  %v900_v54 = vunpack.c.0.s8 %v836_v50  ;;  %v901_v58 = vunpack.c.0.s8 %v837_v51  ;;  %v838_v59 = vsel %vm774_vm7, 16843009, %v4038_v2  ;;  %v376_v51 = vld [vmem:[%s2285_s7 + $0xc8] sm:$0xff] }
  0xa4   : > { %vm2515_vm4 = vcmp.ne.s32.totalorder %v899_v49, 0  ;;  %v902_v0 = vunpack.c.0.s8 %v838_v59  ;;  %v583_v1 = vunpack.c.0.s8 %v549_v30  ;;  %v584_v5 = vunpack.c.1.s8 %v549_v30  ;;  %v375_v49 = vld [vmem:[%s2285_s7 + $0xc0] sm:$0xff] }
  0xa5   : > { %v4251_v60 = vsel %vm2515_vm4, 4294967295, %v4250_v60  ;;  %v1155_v6 = vsel %vm2515_vm4, %v371_v47, 0.0  ;;  %vm2522_vm13 = vcmp.ne.s32.totalorder %v900_v54, 0  ;;  %v4252_v7 = vmov 0 }
  0xa6   : > { %v4253_v7 = vsel %vm2522_vm13, 4294967295, %v4252_v7  ;;  %vm2526_vm5 = vcmp.ne.s32.totalorder %v901_v58, 0  ;;  %v4254_v9 = vmov 0  ;;  %v585_v10 = vunpack.c.2.s8 %v549_v30  ;;  %1347 = vst [vmem:[%s2337_s24 + $0xa0] sm:$0xff] %v1155_v6 }
  0xa7   : > { %v4255_v9 = vsel %vm2526_vm5, 4294967295, %v4254_v9  ;;  %v1538_v12 = vadd.f32 %v1537_v52, %v1155_v6  ;;  %v1156_v13 = vsel %vm2522_vm13, %v372_v53, 0.0  ;;  %v1157_v18 = vsel %vm2526_vm5, %v373_v56, 0.0  ;;  %v377_v53 = vld [vmem:[%s2285_s7 + $0xd0] sm:$0xff] }
  0xa8   : > { %4256 = vst [vmem:[#allocation33_spill] sm:$0xff] %v4255_v9  ;;  %vm2538_vm7 = vcmp.ne.s32.totalorder %v902_v0, 0  ;;  %v4257_v19 = vmov 0  ;;  %1348 = vst [vmem:[%s2337_s24 + $0xa8] sm:$0xff] %v1156_v13  ;;  %v671_v21 = vpack.c.b16 %v583_v1, %v583_v1  ;;  %v673_v16 = vpack.c.b16 %v584_v5, %v584_v5 }
  0xa9   : > { %v4258_v19 = vsel %vm2538_vm7, 4294967295, %v4257_v19  ;;  %1349 = vst [vmem:[%s2337_s24 + $0xb0] sm:$0xff] %v1157_v18  ;;  %v1158_v20 = vsel %vm2538_vm7, %v374_v61, 0.0  ;;  %v675_v22 = vpack.c.b16 %v585_v10, %v585_v10  ;;  %v1539_v23 = vadd.f32 %v1538_v12, %v1156_v13 }
  0xaa   : > { %1350 = vst [vmem:[%s2337_s24 + $0xb8] sm:$0xff] %v1158_v20  ;;  %v586_v24 = vunpack.c.3.s8 %v549_v30  ;;  %vm4259_vm13 = vnez %v2485_v14  ;;  %v672_v27 = vpack.c.b8 %v671_v21, %v671_v21  ;;  %v674_v28 = vpack.c.b8 %v673_v16, %v673_v16  ;;  %v378_v21 = vld [vmem:[%s2285_s7 + $0xd8] sm:$0xff] }
  0xab   : > { %v550_v25 = vsel %vm4259_vm13, 16843009, %v4038_v2  ;;  %v676_v29 = vpack.c.b8 %v675_v22, %v675_v22  ;;  %v1540_v34 = vadd.f32 %v1539_v23, %v1157_v18  ;;  %v4260_v1 = vmov 0 }
  0xac   : > { %v587_v33 = vunpack.c.0.s8 %v550_v25  ;;  %v677_v35 = vpack.c.b16 %v586_v24, %v586_v24  ;;  %v588_v36 = vunpack.c.1.s8 %v550_v25  ;;  %v589_v39 = vunpack.c.2.s8 %v550_v25 }
  0xad   : > { %vm775_vm7 = vnez %v672_v27  ;;  %vm776_vm4 = vnez %v674_v28  ;;  %vm777_vm6 = vnez %v676_v29  ;;  %v1541_v40 = vadd.f32 %v1540_v34, %v1158_v20 }
  0xae   : > { %v679_v30 = vpack.c.b16 %v587_v33, %v587_v33  ;;  %v839_v14 = vsel %vm775_vm7, 16843009, %v4038_v2  ;;  %v840_v44 = vsel %vm776_vm4, 16843009, %v4038_v2  ;;  %v841_v47 = vsel %vm777_vm6, 16843009, %v4038_v2 }
  0xaf   : > { %v903_v50 = vunpack.c.0.s8 %v839_v14  ;;  %v904_v52 = vunpack.c.0.s8 %v840_v44  ;;  %v905_v54 = vunpack.c.0.s8 %v841_v47  ;;  %v678_v56 = vpack.c.b8 %v677_v35, %v677_v35  ;;  %v379_v33 = vld [vmem:[%s2285_s7 + $0xe0] sm:$0xff] }
  0xb0   : > { %v680_v58 = vpack.c.b8 %v679_v30, %v679_v30  ;;  %v681_v59 = vpack.c.b16 %v588_v36, %v588_v36  ;;  %v683_v61 = vpack.c.b16 %v589_v39, %v589_v39  ;;  %v590_v0 = vunpack.c.3.s8 %v550_v25 }
  0xb1   : > { %vm2557_vm13 = vcmp.ne.s32.totalorder %v903_v50, 0  ;;  %vm2561_vm6 = vcmp.ne.s32.totalorder %v904_v52, 0  ;;  %v4262_v5 = vmov 0  ;;  %vm2565_vm4 = vcmp.ne.s32.totalorder %v905_v54, 0 }
  0xb2   : > { %v4261_v1 = vsel %vm2557_vm13, 4294967295, %v4260_v1  ;;  %v4263_v5 = vsel %vm2561_vm6, 4294967295, %v4262_v5  ;;  %v4264_v6 = vmov 0  ;;  %vm778_vm7 = vnez %v678_v56 }
  0xb3   : > { %v4265_v6 = vsel %vm2565_vm4, 4294967295, %v4264_v6  ;;  %v1159_v10 = vsel %vm2557_vm13, %v375_v49, 0.0  ;;  %v1160_v12 = vsel %vm2561_vm6, %v376_v51, 0.0  ;;  %v1161_v13 = vsel %vm2565_vm4, %v377_v53, 0.0  ;;  %v381_v49 = vld [vmem:[%s2285_s7 + $0xf0] sm:$0xff] }
  0xb4   : > { %v842_v18 = vsel %vm778_vm7, 16843009, %v4038_v2  ;;  %1351 = vst [vmem:[%s2337_s24 + $0xc0] sm:$0xff] %v1159_v10  ;;  %v1542_v20 = vadd.f32 %v1541_v40, %v1159_v10  ;;  %1352 = vst [vmem:[%s2337_s24 + $0xc8] sm:$0xff] %v1160_v12  ;;  %vm779_vm5 = vnez %v680_v58  ;;  %v682_v22 = vpack.c.b8 %v681_v59, %v681_v59  ;;  %v380_v40 = vld [vmem:[%s2285_s7 + $0xe8] sm:$0xff] }
  0xb5   : > { %1353 = vst [vmem:[%s2337_s24 + $0xd0] sm:$0xff] %v1161_v13  ;;  %v906_v16 = vunpack.c.0.s8 %v842_v18  ;;  %v843_v23 = vsel %vm779_vm5, 16843009, %v4038_v2  ;;  %v684_v24 = vpack.c.b8 %v683_v61, %v683_v61  ;;  %v685_v25 = vpack.c.b16 %v590_v0, %v590_v0  ;;  %v328_v58 = vld [vmem:[%s2293_s19 + $0x48] sm:$0xff]  ;;  %v382_v0 = vld [vmem:[%s2285_s7 + $0xf8] sm:$0xff] }
  0xb6   : > { %vm4266_vm4 = vnez %v2531_v11  ;;  %v1543_v28 = vadd.f32 %v1542_v20, %v1160_v12  ;;  %v4267_v29 = vmov 0  ;;  %v907_v34 = vunpack.c.0.s8 %v843_v23 }
  0xb7   : > { %v551_v27 = vsel %vm4266_vm4, 16843009, %v4038_v2  ;;  %vm2584_vm7 = vcmp.ne.s32.totalorder %v906_v16, 0  ;;  %vm780_vm6 = vnez %v682_v22  ;;  %vm781_vm5 = vnez %v684_v24  ;;  %v2620_v16 = vld [vmem:[%s2293_s19 + $0x50] sm:$0xff] }
  0xb8   : > { %v4268_v29 = vsel %vm2584_vm7, 4294967295, %v4267_v29  ;;  %v1162_v35 = vsel %vm2584_vm7, %v378_v21, 0.0  ;;  %v844_v36 = vsel %vm780_vm6, 16843009, %v4038_v2  ;;  %v686_v39 = vpack.c.b8 %v685_v25, %v685_v25 }
  0xb9   : > { %v1544_v30 = vadd.f32 %v1543_v28, %v1161_v13  ;;  %1354 = vst [vmem:[%s2337_s24 + $0xd8] sm:$0xff] %v1162_v35  ;;  %vm2593_vm4 = vcmp.ne.s32.totalorder %v907_v34, 0  ;;  %v4269_v11 = vmov 0  ;;  %v908_v14 = vunpack.c.0.s8 %v844_v36 }
  0xba   : > { %v4270_v11 = vsel %vm2593_vm4, 4294967295, %v4269_v11  ;;  %v845_v44 = vsel %vm781_vm5, 16843009, %v4038_v2  ;;  %v1163_v47 = vsel %vm2593_vm4, %v379_v33, 0.0  ;;  %vm782_vm6 = vnez %v686_v39 }
  0xbb   : > { %v909_v50 = vunpack.c.0.s8 %v845_v44  ;;  %v591_v51 = vunpack.c.0.s8 %v551_v27  ;;  %v1545_v52 = vadd.f32 %v1544_v30, %v1162_v35  ;;  %1355 = vst [vmem:[%s2337_s24 + $0xe0] sm:$0xff] %v1163_v47  ;;  %vm2603_vm7 = vcmp.ne.s32.totalorder %v908_v14, 0 }
  0xbc   : > { %v4271_v53 = vmov 0  ;;  %v846_v54 = vsel %vm782_vm6, 16843009, %v4038_v2  ;;  %v592_v56 = vunpack.c.1.s8 %v551_v27  ;;  %v1164_v59 = vsel %vm2603_vm7, %v380_v40, 0.0  ;;  %v383_v40 = vld [vmem:[%s2285_s7 + $0x100] sm:$0xff] }
  0xbd   : > { %v4272_v53 = vsel %vm2603_vm7, 4294967295, %v4271_v53  ;;  %vm2611_vm5 = vcmp.ne.s32.totalorder %v909_v50, 0  ;;  %v4273_v61 = vmov 0  ;;  %v910_v10 = vunpack.c.0.s8 %v846_v54  ;;  %1356 = vst [vmem:[%s2337_s24 + $0xe8] sm:$0xff] %v1164_v59 }
  0xbe   : > { %v4274_v61 = vsel %vm2611_vm5, 4294967295, %v4273_v61  ;;  %v687_v12 = vpack.c.b16 %v591_v51, %v591_v51  ;;  %v1546_v13 = vadd.f32 %v1545_v52, %v1163_v47  ;;  %v1165_v18 = vsel %vm2611_vm5, %v381_v49, 0.0  ;;  %v384_v51 = vld [vmem:[%s2285_s7 + $0x108] sm:$0xff] }
  0xbf   : > { %v689_v20 = vpack.c.b16 %v592_v56, %v592_v56  ;;  %v593_v21 = vunpack.c.2.s8 %v551_v27  ;;  %1357 = vst [vmem:[%s2337_s24 + $0xf0] sm:$0xff] %v1165_v18  ;;  %vm2623_vm6 = vcmp.ne.s32.totalorder %v910_v10, 0  ;;  %v4275_v22 = vmov 0 }
  0xc0   : > { %v4276_v22 = vsel %vm2623_vm6, 4294967295, %v4275_v22  ;;  %v688_v23 = vpack.c.b8 %v687_v12, %v687_v12  ;;  %v594_v24 = vunpack.c.3.s8 %v551_v27  ;;  %vm344_vm7 = vnez %v328_v58  ;;  %v385_v12 = vld [vmem:[%s2285_s7 + $0x110] sm:$0xff] }
  0xc1   : > { %v1547_v25 = vadd.f32 %v1546_v13, %v1164_v59  ;;  %v1166_v28 = vsel %vm2623_vm6, %v382_v0, 0.0  ;;  %v690_v33 = vpack.c.b8 %v689_v20, %v689_v20  ;;  %v691_v34 = vpack.c.b16 %v593_v21, %v593_v21 }
  0xc2   : > { %1358 = vst [vmem:[%s2337_s24 + $0xf8] sm:$0xff] %v1166_v28  ;;  %vm783_vm5 = vnez %v688_v23  ;;  %v693_v35 = vpack.c.b16 %v594_v24, %v594_v24  ;;  %v552_v36 = vsel %vm344_vm7, 16843009, %v4038_v2  ;;  %v4277_v56 = vmov 0  ;;  %v386_v23 = vld [vmem:[%s2285_s7 + $0x118] sm:$0xff] }
  0xc3   : > { %v1548_v39 = vadd.f32 %v1547_v25, %v1165_v18  ;;  %v847_v30 = vsel %vm783_vm5, 16843009, %v4038_v2  ;;  %vm784_vm13 = vnez %v690_v33  ;;  %v692_v27 = vpack.c.b8 %v691_v34, %v691_v34 }
  0xc4   : > { %v911_v14 = vunpack.c.0.s8 %v847_v30  ;;  %v848_v44 = vsel %vm784_vm13, 16843009, %v4038_v2  ;;  %v694_v47 = vpack.c.b8 %v693_v35, %v693_v35  ;;  %v595_v49 = vunpack.c.0.s8 %v552_v36 }
  0xc5   : > { %v1549_v50 = vadd.f32 %v1548_v39, %v1166_v28  ;;  %v912_v52 = vunpack.c.0.s8 %v848_v44  ;;  %vm785_vm7 = vnez %v692_v27  ;;  %v596_v54 = vunpack.c.1.s8 %v552_v36 }
  0xc6   : > { %vm2636_vm4 = vcmp.ne.s32.totalorder %v911_v14, 0  ;;  %v849_v58 = vsel %vm785_vm7, 16843009, %v4038_v2  ;;  %vm786_vm5 = vnez %v694_v47  ;;  %v695_v59 = vpack.c.b16 %v595_v49, %v595_v49 }
  0xc7   : > { %v4278_v56 = vsel %vm2636_vm4, 4294967295, %v4277_v56  ;;  %v1167_v0 = vsel %vm2636_vm4, %v383_v40, 0.0  ;;  %vm2643_vm13 = vcmp.ne.s32.totalorder %v912_v52, 0  ;;  %v4279_v10 = vmov 0 }
  0xc8   : > { %v4280_v10 = vsel %vm2643_vm13, 4294967295, %v4279_v10  ;;  %v913_v13 = vunpack.c.0.s8 %v849_v58  ;;  %v850_v18 = vsel %vm786_vm5, 16843009, %v4038_v2  ;;  %1359 = vst [vmem:[%s2337_s24 + $0x100] sm:$0xff] %v1167_v0  ;;  %v1550_v20 = vadd.f32 %v1549_v50, %v1167_v0 }
  0xc9   : > { %v1168_v21 = vsel %vm2643_vm13, %v384_v51, 0.0  ;;  %v914_v24 = vunpack.c.0.s8 %v850_v18  ;;  %v696_v25 = vpack.c.b8 %v695_v59, %v695_v59  ;;  %v4281_v28 = vmov 0 }
  0xca   : > { %1360 = vst [vmem:[%s2337_s24 + $0x108] sm:$0xff] %v1168_v21  ;;  %vm2654_vm7 = vcmp.ne.s32.totalorder %v913_v13, 0  ;;  %v697_v33 = vpack.c.b16 %v596_v54, %v596_v54  ;;  %v597_v34 = vunpack.c.2.s8 %v552_v36  ;;  %v598_v35 = vunpack.c.3.s8 %v552_v36  ;;  %v387_v36 = vld [vmem:[%s2285_s7 + $0x120] sm:$0xff] }
  0xcb   : > { %v4282_v28 = vsel %vm2654_vm7, 4294967295, %v4281_v28  ;;  %v1551_v39 = vadd.f32 %v1550_v20, %v1168_v21  ;;  %v1169_v30 = vsel %vm2654_vm7, %v385_v12, 0.0  ;;  %vm2660_vm5 = vcmp.ne.s32.totalorder %v914_v24, 0  ;;  %v388_v21 = vld [vmem:[%s2285_s7 + $0x128] sm:$0xff] }
  0xcc   : > { %v4283_v27 = vmov 0  ;;  %vm787_vm13 = vnez %v696_v25  ;;  %1361 = vst [vmem:[%s2337_s24 + $0x110] sm:$0xff] %v1169_v30  ;;  %v1170_v40 = vsel %vm2660_vm5, %v386_v23, 0.0  ;;  %v698_v44 = vpack.c.b8 %v697_v33, %v697_v33 }
  0xcd   : > { %v4284_v27 = vsel %vm2660_vm5, 4294967295, %v4283_v27  ;;  %v851_v14 = vsel %vm787_vm13, 16843009, %v4038_v2  ;;  %v699_v47 = vpack.c.b16 %v597_v34, %v597_v34  ;;  %v1552_v49 = vadd.f32 %v1551_v39, %v1169_v30  ;;  %1362 = vst [vmem:[%s2337_s24 + $0x118] sm:$0xff] %v1170_v40 }
  0xce   : > { %v915_v50 = vunpack.c.0.s8 %v851_v14  ;;  %v701_v51 = vpack.c.b16 %v598_v35, %v598_v35  ;;  %vm4285_vm7 = vnez %v2620_v16  ;;  %vm788_vm4 = vnez %v698_v44  ;;  %v389_v35 = vld [vmem:[%s2285_s7 + $0x130] sm:$0xff]  ;;  %v390_v44 = vld [vmem:[%s2285_s7 + $0x138] sm:$0xff] }
  0xcf   : > { %v553_v52 = vsel %vm4285_vm7, 16843009, %v4038_v2  ;;  %v700_v54 = vpack.c.b8 %v699_v47, %v699_v47  ;;  %v1553_v0 = vadd.f32 %v1552_v49, %v1170_v40  ;;  %v4286_v12 = vmov 0 }
  0xd0   : > { %v599_v58 = vunpack.c.0.s8 %v553_v52  ;;  %v600_v59 = vunpack.c.1.s8 %v553_v52  ;;  %vm2673_vm13 = vcmp.ne.s32.totalorder %v915_v50, 0  ;;  %v852_v13 = vsel %vm788_vm4, 16843009, %v4038_v2 }
  0xd1   : > { %v4287_v12 = vsel %vm2673_vm13, 4294967295, %v4286_v12  ;;  %v702_v18 = vpack.c.b8 %v701_v51, %v701_v51  ;;  %v1171_v20 = vsel %vm2673_vm13, %v387_v36, 0.0  ;;  %v916_v16 = vunpack.c.0.s8 %v852_v13 }
  0xd2   : > { %vm789_vm7 = vnez %v700_v54  ;;  %v703_v23 = vpack.c.b16 %v599_v58, %v599_v58  ;;  %1363 = vst [vmem:[%s2337_s24 + $0x120] sm:$0xff] %v1171_v20  ;;  %v1554_v24 = vadd.f32 %v1553_v0, %v1171_v20  ;;  %v705_v33 = vpack.c.b16 %v600_v59, %v600_v59  ;;  %v330_v58 = vld [vmem:[%s2293_s19 + $0x58] sm:$0xff] }
  0xd3   : > { %v853_v25 = vsel %vm789_vm7, 16843009, %v4038_v2  ;;  %vm790_vm5 = vnez %v702_v18  ;;  %vm2683_vm6 = vcmp.ne.s32.totalorder %v916_v16, 0  ;;  %v4288_v34 = vmov 0  ;;  %v331_v18 = vld [vmem:[%s2293_s19 + $0x60] sm:$0xff] }
  0xd4   : > { %v4289_v34 = vsel %vm2683_vm6, 4294967295, %v4288_v34  ;;  %v917_v39 = vunpack.c.0.s8 %v853_v25  ;;  %v854_v30 = vsel %vm790_vm5, 16843009, %v4038_v2  ;;  %v704_v40 = vpack.c.b8 %v703_v23, %v703_v23  ;;  %v391_v16 = vld [vmem:[%s2285_s7 + $0x140] sm:$0xff] }
  0xd5   : > { %v1172_v14 = vsel %vm2683_vm6, %v388_v21, 0.0  ;;  %v918_v47 = vunpack.c.0.s8 %v854_v30  ;;  %v706_v49 = vpack.c.b8 %v705_v33, %v705_v33  ;;  %v601_v36 = vunpack.c.2.s8 %v553_v52 }
  0xd6   : > { %1364 = vst [vmem:[%s2337_s24 + $0x128] sm:$0xff] %v1172_v14  ;;  %v1555_v50 = vadd.f32 %v1554_v24, %v1172_v14  ;;  %vm2693_vm4 = vcmp.ne.s32.totalorder %v917_v39, 0  ;;  %v4290_v51 = vmov 0  ;;  %vm791_vm5 = vnez %v704_v40  ;;  %v392_v24 = vld [vmem:[%s2285_s7 + $0x148] sm:$0xff] }
  0xd7   : > { %v4291_v51 = vsel %vm2693_vm4, 4294967295, %v4290_v51  ;;  %v602_v54 = vunpack.c.3.s8 %v553_v52  ;;  %v1173_v59 = vsel %vm2693_vm4, %v389_v35, 0.0  ;;  %vm2700_vm7 = vcmp.ne.s32.totalorder %v918_v47, 0 }
  0xd8   : > { %v4292_v0 = vmov 0  ;;  %v855_v13 = vsel %vm791_vm5, 16843009, %v4038_v2  ;;  %vm792_vm6 = vnez %v706_v49  ;;  %1365 = vst [vmem:[%s2337_s24 + $0x130] sm:$0xff] %v1173_v59  ;;  %v1556_v20 = vadd.f32 %v1555_v50, %v1173_v59 }
  0xd9   : > { %v4293_v0 = vsel %vm2700_vm7, 4294967295, %v4292_v0  ;;  %v1174_v21 = vsel %vm2700_vm7, %v390_v44, 0.0  ;;  %v919_v23 = vunpack.c.0.s8 %v855_v13  ;;  %v856_v52 = vsel %vm792_vm6, 16843009, %v4038_v2 }
  0xda   : > { %1366 = vst [vmem:[%s2337_s24 + $0x138] sm:$0xff] %v1174_v21  ;;  %v920_v25 = vunpack.c.0.s8 %v856_v52  ;;  %v707_v33 = vpack.c.b16 %v601_v36, %v601_v36  ;;  %v709_v35 = vpack.c.b16 %v602_v54, %v602_v54  ;;  %vm346_vm4 = vnez %v330_v58 }
  0xdb   : > { %v1557_v39 = vadd.f32 %v1556_v20, %v1174_v21  ;;  %vm2713_vm5 = vcmp.ne.s32.totalorder %v919_v23, 0  ;;  %v4294_v30 = vmov 0  ;;  %v554_v40 = vsel %vm346_vm4, 16843009, %v4038_v2  ;;  %v2729_v20 = vld [vmem:[%s2293_s19 + $0x68] sm:$0xff] }
  0xdc   : > { %v4295_v30 = vsel %vm2713_vm5, 4294967295, %v4294_v30  ;;  %v1175_v14 = vsel %vm2713_vm5, %v391_v16, 0.0  ;;  %vm2720_vm6 = vcmp.ne.s32.totalorder %v920_v25, 0  ;;  %v4297_v44 = vmov 0  ;;  %v393_v25 = vld [vmem:[%s2285_s7 + $0x150] sm:$0xff] }
  0xdd   : > { %4296 = vst [vmem:[#allocation34_spill] sm:$0xff] %v4295_v30  ;;  %v4298_v44 = vsel %vm2720_vm6, 4294967295, %v4297_v44  ;;  %v708_v47 = vpack.c.b8 %v707_v33, %v707_v33  ;;  %v710_v49 = vpack.c.b8 %v709_v35, %v709_v35  ;;  %1367 = vst [vmem:[%s2337_s24 + $0x140] sm:$0xff] %v1175_v14  ;;  %v1558_v36 = vadd.f32 %v1557_v39, %v1175_v14  ;;  %v394_v35 = vld [vmem:[%s2285_s7 + $0x158] sm:$0xff] }
  0xde   : > { %4299 = vst [vmem:[#allocation35_spill] sm:$0xff] %v4298_v44  ;;  %v1176_v50 = vsel %vm2720_vm6, %v392_v24, 0.0  ;;  %v603_v54 = vunpack.c.0.s8 %v554_v40  ;;  %v604_v58 = vunpack.c.1.s8 %v554_v40  ;;  %v605_v59 = vunpack.c.2.s8 %v554_v40 }
  0xdf   : > { %1368 = vst [vmem:[%s2337_s24 + $0x148] sm:$0xff] %v1176_v50  ;;  %vm793_vm4 = vnez %v708_v47  ;;  %vm794_vm7 = vnez %v710_v49  ;;  %v606_v13 = vunpack.c.3.s8 %v554_v40  ;;  %v1559_v21 = vadd.f32 %v1558_v36, %v1176_v50 }
  0xe0   : > { %v857_v16 = vsel %vm793_vm4, 16843009, %v4038_v2  ;;  %v858_v23 = vsel %vm794_vm7, 16843009, %v4038_v2  ;;  %v711_v52 = vpack.c.b16 %v603_v54, %v603_v54  ;;  %v713_v39 = vpack.c.b16 %v604_v58, %v604_v58 }
  0xe1   : > { %v921_v33 = vunpack.c.0.s8 %v857_v16  ;;  %v922_v24 = vunpack.c.0.s8 %v858_v23  ;;  %v715_v14 = vpack.c.b16 %v605_v59, %v605_v59  ;;  %v717_v49 = vpack.c.b16 %v606_v13, %v606_v13 }
  0xe2   : > { %v712_v47 = vpack.c.b8 %v711_v52, %v711_v52  ;;  %vm4300_vm6 = vnez %v331_v18  ;;  %v4301_v36 = vmov 0  ;;  %v4304_v50 = vmov 0  ;;  %v395_v52 = vld [vmem:[%s2285_s7 + $0x160] sm:$0xff] }
  0xe3   : > { %v555_v40 = vsel %vm4300_vm6, 16843009, %v4038_v2  ;;  %vm2738_vm4 = vcmp.ne.s32.totalorder %v921_v33, 0  ;;  %vm2742_vm7 = vcmp.ne.s32.totalorder %v922_v24, 0  ;;  %v714_v54 = vpack.c.b8 %v713_v39, %v713_v39  ;;  %v396_v39 = vld [vmem:[%s2285_s7 + $0x168] sm:$0xff] }
  0xe4   : > { %v4302_v36 = vsel %vm2738_vm4, 4294967295, %v4301_v36  ;;  %v4305_v50 = vsel %vm2742_vm7, 4294967295, %v4304_v50  ;;  %v716_v58 = vpack.c.b8 %v715_v14, %v715_v14  ;;  %v1177_v59 = vsel %vm2738_vm4, %v393_v25, 0.0 }
  0xe5   : > { %4303 = vst [vmem:[#allocation36_spill] sm:$0xff] %v4302_v36  ;;  %4306 = vst [vmem:[#allocation37_spill] sm:$0xff] %v4305_v50  ;;  %v1178_v18 = vsel %vm2742_vm7, %v394_v35, 0.0  ;;  %vm795_vm6 = vnez %v712_v47  ;;  %v718_v13 = vpack.c.b8 %v717_v49, %v717_v49  ;;  %v1560_v16 = vadd.f32 %v1559_v21, %v1177_v59  ;;  %v397_v47 = vld [vmem:[%s2285_s7 + $0x170] sm:$0xff] }
  0xe6   : > { %1369 = vst [vmem:[%s2337_s24 + $0x150] sm:$0xff] %v1177_v59  ;;  %1370 = vst [vmem:[%s2337_s24 + $0x158] sm:$0xff] %v1178_v18  ;;  %v859_v23 = vsel %vm795_vm6, 16843009, %v4038_v2  ;;  %vm796_vm5 = vnez %v714_v54  ;;  %vm797_vm13 = vnez %v716_v58  ;;  %v4307_v54 = vmov 0  ;;  %v398_v58 = vld [vmem:[%s2285_s7 + $0x178] sm:$0xff] }
  0xe7   : > { %v923_v33 = vunpack.c.0.s8 %v859_v23  ;;  %v860_v24 = vsel %vm796_vm5, 16843009, %v4038_v2  ;;  %v861_v25 = vsel %vm797_vm13, 16843009, %v4038_v2  ;;  %vm798_vm4 = vnez %v718_v13 }
  0xe8   : > { %v1561_v35 = vadd.f32 %v1560_v16, %v1178_v18  ;;  %v924_v14 = vunpack.c.0.s8 %v860_v24  ;;  %v925_v21 = vunpack.c.0.s8 %v861_v25  ;;  %v862_v49 = vsel %vm798_vm4, 16843009, %v4038_v2  ;;  %v2775_v24 = vld [vmem:[%s2293_s19 + $0x70] sm:$0xff] }
  0xe9   : > { %vm2759_vm6 = vcmp.ne.s32.totalorder %v923_v33, 0  ;;  %v926_v59 = vunpack.c.0.s8 %v862_v49  ;;  %v607_v23 = vunpack.c.0.s8 %v555_v40  ;;  %v608_v50 = vunpack.c.1.s8 %v555_v40 }
  0xea   : > { %v4308_v54 = vsel %vm2759_vm6, 4294967295, %v4307_v54  ;;  %v1179_v18 = vsel %vm2759_vm6, %v395_v52, 0.0  ;;  %vm2766_vm13 = vcmp.ne.s32.totalorder %v924_v14, 0  ;;  %v4310_v13 = vmov 0 }
  0xeb   : > { %4309 = vst [vmem:[#allocation38_spill] sm:$0xff] %v4308_v54  ;;  %v4311_v13 = vsel %vm2766_vm13, 4294967295, %v4310_v13  ;;  %vm2770_vm5 = vcmp.ne.s32.totalorder %v925_v21, 0  ;;  %v4313_v16 = vmov 0  ;;  %v609_v33 = vunpack.c.2.s8 %v555_v40  ;;  %1371 = vst [vmem:[%s2337_s24 + $0x160] sm:$0xff] %v1179_v18 }
  0xec   : > { %4312 = vst [vmem:[#allocation39_spill] sm:$0xff] %v4311_v13  ;;  %v4314_v16 = vsel %vm2770_vm5, 4294967295, %v4313_v16  ;;  %v1562_v25 = vadd.f32 %v1561_v35, %v1179_v18  ;;  %v1180_v49 = vsel %vm2766_vm13, %v396_v39, 0.0  ;;  %v1181_v52 = vsel %vm2770_vm5, %v397_v47, 0.0 }
  0xed   : > { %4315 = vst [vmem:[#allocation40_spill] sm:$0xff] %v4314_v16  ;;  %vm2782_vm4 = vcmp.ne.s32.totalorder %v926_v59, 0  ;;  %v4316_v14 = vmov 0  ;;  %1372 = vst [vmem:[%s2337_s24 + $0x168] sm:$0xff] %v1180_v49  ;;  %v719_v2 = vpack.c.b16 %v607_v23, %v607_v23  ;;  %v721_v54 = vpack.c.b16 %v608_v50, %v608_v50 }
  0xee   : > { %v4317_v14 = vsel %vm2782_vm4, 4294967295, %v4316_v14  ;;  %1373 = vst [vmem:[%s2337_s24 + $0x170] sm:$0xff] %v1181_v52  ;;  %v1182_v21 = vsel %vm2782_vm4, %v398_v58, 0.0  ;;  %v723_v36 = vpack.c.b16 %v609_v33, %v609_v33  ;;  %v1563_v44 = vadd.f32 %v1562_v25, %v1180_v49  ;;  %v400_v49 = vld [vmem:[%s2285_s7 + $0x188] sm:$0xff] }
  0xef   : > { %4318 = vst [vmem:[#allocation41_spill] sm:$0xff] %v4317_v14  ;;  %1374 = vst [vmem:[%s2337_s24 + $0x178] sm:$0xff] %v1182_v21  ;;  %v610_v35 = vunpack.c.3.s8 %v555_v40  ;;  %v4319_v18 = vmov 0   ;;  %vm4320_vm13 = vnez %v2729_v20  ;;  %v720_v47 = vpack.c.b8 %v719_v2, %v719_v2 }
  0xf0   : > { %v556_v39 = vsel %vm4320_vm13, 16843009, %v4319_v18  ;;  %v722_v59 = vpack.c.b8 %v721_v54, %v721_v54  ;;  %v724_v16 = vpack.c.b8 %v723_v36, %v723_v36  ;;  %v1564_v14 = vadd.f32 %v1563_v44, %v1181_v52  ;;  %v399_v54 = vld [vmem:[%s2285_s7 + $0x180] sm:$0xff]  ;;  %v401_v44 = vld [vmem:[%s2285_s7 + $0x190] sm:$0xff] }
  0xf1   : > { %v611_v13 = vunpack.c.0.s8 %v556_v39  ;;  %v725_v58 = vpack.c.b16 %v610_v35, %v610_v35  ;;  %v612_v50 = vunpack.c.1.s8 %v556_v39  ;;  %v613_v23 = vunpack.c.2.s8 %v556_v39 }
  0xf2   : > { %vm799_vm4 = vnez %v720_v47  ;;  %vm800_vm6 = vnez %v722_v59  ;;  %vm801_vm7 = vnez %v724_v16  ;;  %v1565_v33 = vadd.f32 %v1564_v14, %v1182_v21 }
  0xf3   : > { %v727_v40 = vpack.c.b16 %v611_v13, %v611_v13  ;;  %v863_v20 = vsel %vm799_vm4, 16843009, %v4319_v18  ;;  %v864_v25 = vsel %vm800_vm6, 16843009, %v4319_v18  ;;  %v865_v2 = vsel %vm801_vm7, 16843009, %v4319_v18 }
  0xf4   : > { %v927_v36 = vunpack.c.0.s8 %v863_v20  ;;  %v928_v30 = vunpack.c.0.s8 %v864_v25  ;;  %v929_v52 = vunpack.c.0.s8 %v865_v2  ;;  %v726_v35 = vpack.c.b8 %v725_v58, %v725_v58 }
  0xf5   : > { %v728_v47 = vpack.c.b8 %v727_v40, %v727_v40  ;;  %v729_v13 = vpack.c.b16 %v612_v50, %v612_v50  ;;  %v731_v16 = vpack.c.b16 %v613_v23, %v613_v23  ;;  %v614_v14 = vunpack.c.3.s8 %v556_v39  ;;  %v402_v40 = vld [vmem:[%s2285_s7 + $0x198] sm:$0xff] }
  0xf6   : > { %vm2801_vm13 = vcmp.ne.s32.totalorder %v927_v36, 0  ;;  %v4321_v21 = vmov 0  ;;  %vm2805_vm7 = vcmp.ne.s32.totalorder %v928_v30, 0  ;;  %v4323_v59 = vmov 0 }
  0xf7   : > { %v4322_v21 = vsel %vm2801_vm13, 4294967295, %v4321_v21  ;;  %v4324_v59 = vsel %vm2805_vm7, 4294967295, %v4323_v59  ;;  %vm2809_vm6 = vcmp.ne.s32.totalorder %v929_v52, 0  ;;  %v4325_v20 = vmov 0 }
  0xf8   : > { %v4326_v20 = vsel %vm2809_vm6, 4294967295, %v4325_v20  ;;  %vm802_vm4 = vnez %v726_v35  ;;  %v1183_v58 = vsel %vm2801_vm13, %v399_v54, 0.0  ;;  %v1184_v50 = vsel %vm2805_vm7, %v400_v49, 0.0  ;;  %v403_v35 = vld [vmem:[%s2285_s7 + $0x1a0] sm:$0xff] }
  0xf9   : > { %4327 = vst [vmem:[#allocation42_spill] sm:$0xff] %v4326_v20  ;;  %v1185_v39 = vsel %vm2809_vm6, %v401_v44, 0.0  ;;  %v866_v30 = vsel %vm802_vm4, 16843009, %v4319_v18  ;;  %1375 = vst [vmem:[%s2337_s24 + $0x180] sm:$0xff] %v1183_v58  ;;  %v1566_v23 = vadd.f32 %v1565_v33, %v1183_v58  ;;  %vm803_vm5 = vnez %v728_v47  ;;  %v415_v20 = vld [vmem:[%s2285_s7 + $0x200] sm:$0xff] }
  0xfa   : > { %1376 = vst [vmem:[%s2337_s24 + $0x188] sm:$0xff] %v1184_v50  ;;  %1377 = vst [vmem:[%s2337_s24 + $0x190] sm:$0xff] %v1185_v39  ;;  %v930_v25 = vunpack.c.0.s8 %v866_v30  ;;  %v730_v2 = vpack.c.b8 %v729_v13, %v729_v13  ;;  %v867_v54 = vsel %vm803_vm5, 16843009, %v4319_v18  ;;  %v732_v36 = vpack.c.b8 %v731_v16, %v731_v16 }
  0xfb   : > { %v733_v49 = vpack.c.b16 %v614_v14, %v614_v14  ;;  %vm4328_vm6 = vnez %v2775_v24  ;;  %v1567_v52 = vadd.f32 %v1566_v23, %v1184_v50  ;;  %v4329_v33 = vmov 0  ;;  %v404_v50 = vld [vmem:[%s2285_s7 + $0x1a8] sm:$0xff] }
  0xfc   : > { %v557_v44 = vsel %vm4328_vm6, 16843009, %v4319_v18  ;;  %vm2828_vm4 = vcmp.ne.s32.totalorder %v930_v25, 0  ;;  %v931_v58 = vunpack.c.0.s8 %v867_v54  ;;  %vm804_vm7 = vnez %v730_v2  ;;  %v405_v25 = vld [vmem:[%s2285_s7 + $0x1b0] sm:$0xff] }
  0xfd   : > { %v4330_v33 = vsel %vm2828_vm4, 4294967295, %v4329_v33  ;;  %v1186_v47 = vsel %vm2828_vm4, %v402_v40, 0.0  ;;  %v868_v13 = vsel %vm804_vm7, 16843009, %v4319_v18  ;;  %vm805_vm5 = vnez %v732_v36 }
  0xfe   : > { %4331 = vst [vmem:[#allocation43_spill] sm:$0xff] %v4330_v33  ;;  %v734_v16 = vpack.c.b8 %v733_v49, %v733_v49  ;;  %v1568_v14 = vadd.f32 %v1567_v52, %v1185_v39  ;;  %1378 = vst [vmem:[%s2337_s24 + $0x198] sm:$0xff] %v1186_v47  ;;  %vm2837_vm6 = vcmp.ne.s32.totalorder %v931_v58, 0  ;;  %v4332_v24 = vmov 0  ;;  %v334_v58 = vld [vmem:[%s2293_s19 + $0x78] sm:$0xff] }
  0xff   : > { %v4333_v24 = vsel %vm2837_vm6, 4294967295, %v4332_v24  ;;  %v932_v30 = vunpack.c.0.s8 %v868_v13  ;;  %v869_v23 = vsel %vm805_vm5, 16843009, %v4319_v18  ;;  %v1187_v40 = vsel %vm2837_vm6, %v403_v35, 0.0 }
 0x100   : > { %4334 = vst [vmem:[#allocation44_spill] sm:$0xff] %v4333_v24  ;;  %v933_v2 = vunpack.c.0.s8 %v869_v23  ;;  %vm806_vm7 = vnez %v734_v16  ;;  %v615_v54 = vunpack.c.0.s8 %v557_v44  ;;  %v1569_v39 = vadd.f32 %v1568_v14, %v1186_v47  ;;  %1379 = vst [vmem:[%s2337_s24 + $0x1a0] sm:$0xff] %v1187_v40  ;;  %v406_v16 = vld [vmem:[%s2285_s7 + $0x1b8] sm:$0xff] }
 0x101   : > { %vm2847_vm4 = vcmp.ne.s32.totalorder %v932_v30, 0  ;;  %v4335_v36 = vmov 0  ;;  %v870_v49 = vsel %vm806_vm7, 16843009, %v4319_v18  ;;  %v616_v52 = vunpack.c.1.s8 %v557_v44 }
 0x102   : > { %v4336_v36 = vsel %vm2847_vm4, 4294967295, %v4335_v36  ;;  %v1188_v35 = vsel %vm2847_vm4, %v404_v50, 0.0  ;;  %vm2855_vm5 = vcmp.ne.s32.totalorder %v933_v2, 0  ;;  %v4338_v13 = vmov 0 }
 0x103   : > { %4337 = vst [vmem:[#allocation45_spill] sm:$0xff] %v4336_v36  ;;  %v4339_v13 = vsel %vm2855_vm5, 4294967295, %v4338_v13  ;;  %v934_v47 = vunpack.c.0.s8 %v870_v49  ;;  %v735_v14 = vpack.c.b16 %v615_v54, %v615_v54  ;;  %v1570_v23 = vadd.f32 %v1569_v39, %v1187_v40  ;;  %1380 = vst [vmem:[%s2337_s24 + $0x1a8] sm:$0xff] %v1188_v35 }
 0x104   : > { %4340 = vst [vmem:[#allocation46_spill] sm:$0xff] %v4339_v13  ;;  %v1189_v30 = vsel %vm2855_vm5, %v405_v25, 0.0  ;;  %v737_v24 = vpack.c.b16 %v616_v52, %v616_v52  ;;  %v617_v33 = vunpack.c.2.s8 %v557_v44  ;;  %v4341_v36 = vmov 0 }
 0x105   : > { %1381 = vst [vmem:[%s2337_s24 + $0x1b0] sm:$0xff] %v1189_v30  ;;  %vm2865_vm7 = vcmp.ne.s32.totalorder %v934_v47, 0  ;;  %v736_v50 = vpack.c.b8 %v735_v14, %v735_v14  ;;  %v618_v2 = vunpack.c.3.s8 %v557_v44  ;;  %vm350_vm4 = vnez %v334_v58 }
 0x106   : > { %v4342_v36 = vsel %vm2865_vm7, 4294967295, %v4341_v36  ;;  %v1571_v54 = vadd.f32 %v1570_v23, %v1188_v35  ;;  %v1190_v40 = vsel %vm2865_vm7, %v406_v16, 0.0  ;;  %v738_v39 = vpack.c.b8 %v737_v24, %v737_v24  ;;  %v407_v35 = vld [vmem:[%s2285_s7 + $0x1c0] sm:$0xff] }
 0x107   : > { %4343 = vst [vmem:[#allocation47_spill] sm:$0xff] %v4342_v36  ;;  %v739_v49 = vpack.c.b16 %v617_v33, %v617_v33  ;;  %1382 = vst [vmem:[%s2337_s24 + $0x1b8] sm:$0xff] %v1190_v40  ;;  %vm807_vm5 = vnez %v736_v50  ;;  %v741_v25 = vpack.c.b16 %v618_v2, %v618_v2  ;;  %v558_v52 = vsel %vm350_vm4, 16843009, %v4319_v18  ;;  %v408_v2 = vld [vmem:[%s2285_s7 + $0x1c8] sm:$0xff] }
 0x108   : > { %v1199_v47 = vsel %vm2312_vm8, %v415_v20, 0.0  ;;  %v1572_v14 = vadd.f32 %v1571_v54, %v1189_v30  ;;  %v871_v44 = vsel %vm807_vm5, 16843009, %v4319_v18  ;;  %vm808_vm6 = vnez %v738_v39 }
 0x109   : > { %v740_v58 = vpack.c.b8 %v739_v49, %v739_v49  ;;  %1391 = vst [vmem:[%s2337_s24 + $0x200] sm:$0xff] %v1199_v47  ;;  %v935_v16 = vunpack.c.0.s8 %v871_v44  ;;  %v872_v33 = vsel %vm808_vm6, 16843009, %v4319_v18  ;;  %v742_v24 = vpack.c.b8 %v741_v25, %v741_v25  ;;  %v409_v25 = vld [vmem:[%s2285_s7 + $0x1d0] sm:$0xff] }
 0x10a   : > { %v619_v23 = vunpack.c.0.s8 %v558_v52  ;;  %v1573_v50 = vadd.f32 %v1572_v14, %v1190_v40  ;;  %v936_v36 = vunpack.c.0.s8 %v872_v33  ;;  %v620_v20 = vunpack.c.1.s8 %v558_v52  ;;  %v410_v33 = vld [vmem:[%s2285_s7 + $0x1d8] sm:$0xff] }
 0x10b   : > { %vm809_vm4 = vnez %v740_v58  ;;  %vm2880_vm8 = vcmp.ne.s32.totalorder %v935_v16, 0  ;;  %v4344_v30 = vmov 0  ;;  %vm810_vm5 = vnez %v742_v24 }
 0x10c   : > { %v4345_v30 = vsel %vm2880_vm8, 4294967295, %v4344_v30  ;;  %v873_v54 = vsel %vm809_vm4, 16843009, %v4319_v18  ;;  %v743_v39 = vpack.c.b16 %v619_v23, %v619_v23  ;;  %v1191_v49 = vsel %vm2880_vm8, %v407_v35, 0.0 }
 0x10d   : > { %4346 = vst [vmem:[#allocation48_spill] sm:$0xff] %v4345_v30  ;;  %vm2887_vm6 = vcmp.ne.s32.totalorder %v936_v36, 0  ;;  %v4347_v40 = vmov 0  ;;  %v937_v14 = vunpack.c.0.s8 %v873_v54  ;;  %v874_v44 = vsel %vm810_vm5, 16843009, %v4319_v18  ;;  %1383 = vst [vmem:[%s2337_s24 + $0x1c0] sm:$0xff] %v1191_v49 }
 0x10e   : > { %v4348_v40 = vsel %vm2887_vm6, 4294967295, %v4347_v40  ;;  %v1574_v58 = vadd.f32 %v1573_v50, %v1191_v49  ;;  %v1192_v16 = vsel %vm2887_vm6, %v408_v2, 0.0  ;;  %v938_v24 = vunpack.c.0.s8 %v874_v44  ;;  %v416_v30 = vld [vmem:[%s2285_s7 + $0x208] sm:$0xff] }
 0x10f   : > { %4349 = vst [vmem:[#allocation49_spill] sm:$0xff] %v4348_v40  ;;  %v744_v23 = vpack.c.b8 %v743_v39, %v743_v39  ;;  %1384 = vst [vmem:[%s2337_s24 + $0x1c8] sm:$0xff] %v1192_v16  ;;  %vm2898_vm4 = vcmp.ne.s32.totalorder %v937_v14, 0  ;;  %v4350_v36 = vmov 0  ;;  %v745_v35 = vpack.c.b16 %v620_v20, %v620_v20  ;;  %v417_v39 = vld [vmem:[%s2285_s7 + $0x210] sm:$0xff] }
 0x110   : > { %v4351_v36 = vsel %vm2898_vm4, 4294967295, %v4350_v36  ;;  %v621_v54 = vunpack.c.2.s8 %v558_v52  ;;  %v622_v41 = vunpack.c.3.s8 %v558_v52  ;;  %v1575_v13 = vadd.f32 %v1574_v58, %v1192_v16 }
 0x111   : > { %4352 = vst [vmem:[#allocation50_spill] sm:$0xff] %v4351_v36  ;;  %v1193_v50 = vsel %vm2898_vm4, %v409_v25, 0.0  ;;  %vm2905_vm5 = vcmp.ne.s32.totalorder %v938_v24, 0  ;;  %v4353_v2 = vmov 0  ;;  %vm811_vm6 = vnez %v744_v23  ;;  %v411_v25 = vld [vmem:[%s2285_s7 + $0x1e0] sm:$0xff] }
 0x112   : > { %v4354_v2 = vsel %vm2905_vm5, 4294967295, %v4353_v2  ;;  %1385 = vst [vmem:[%s2337_s24 + $0x1d0] sm:$0xff] %v1193_v50  ;;  %v1194_v20 = vsel %vm2905_vm5, %v410_v33, 0.0  ;;  %v875_v49 = vsel %vm811_vm6, 16843009, %v4319_v18  ;;  %v746_v52 = vpack.c.b8 %v745_v35, %v745_v35 }
 0x113   : > { %4355 = vst [vmem:[#allocation51_spill] sm:$0xff] %v4354_v2  ;;  %v747_v14 = vpack.c.b16 %v621_v54, %v621_v54  ;;  %v1576_v44 = vadd.f32 %v1575_v13, %v1193_v50  ;;  %1386 = vst [vmem:[%s2337_s24 + $0x1d8] sm:$0xff] %v1194_v20  ;;  %v939_v58 = vunpack.c.0.s8 %v875_v49  ;;  %v749_v16 = vpack.c.b16 %v622_v41, %v622_v41  ;;  %v418_v13 = vld [vmem:[%s2285_s7 + $0x218] sm:$0xff]  ;;  %v412_v41 = vld [vmem:[%s2285_s7 + $0x1e8] sm:$0xff] }
 0x114   : > { %v1200_v24 = vsel %vm2316_vm9, %v416_v30, 0.0  ;;  %vm812_vm4 = vnez %v746_v52  ;;  %v1201_v35 = vsel %vm2320_vm10, %v417_v39, 0.0  ;;  %v4356_v50 = vmov 0  ;;  %v413_v52 = vld [vmem:[%s2285_s7 + $0x1f0] sm:$0xff]  ;;  %v428_v2 = vld [vmem:[%s2285_s7 + $0x268] sm:$0xff] }
 0x115   : > { %v748_v23 = vpack.c.b8 %v747_v14, %v747_v14  ;;  %1392 = vst [vmem:[%s2337_s24 + $0x208] sm:$0xff] %v1200_v24  ;;  %v1588_v33 = vadd.f32 %v1200_v24, %v1199_v47  ;;  %v1577_v54 = vadd.f32 %v1576_v44, %v1194_v20  ;;  %vm2922_vm6 = vcmp.ne.s32.totalorder %v939_v58, 0  ;;  %1393 = vst [vmem:[%s2337_s24 + $0x210] sm:$0xff] %v1201_v35  ;;  %v419_v14 = vld [vmem:[%s2285_s7 + $0x220] sm:$0xff]  ;;  %v420_v44 = vld [vmem:[%s2285_s7 + $0x228] sm:$0xff] }
 0x116   : > { %v4357_v50 = vsel %vm2922_vm6, 4294967295, %v4356_v50  ;;  %v876_v30 = vsel %vm812_vm4, 16843009, %v4319_v18  ;;  %v750_v49 = vpack.c.b8 %v749_v16, %v749_v16  ;;  %v1195_v47 = vsel %vm2922_vm6, %v411_v25, 0.0  ;;  %v421_v58 = vld [vmem:[%s2285_s7 + $0x230] sm:$0xff] }
 0x117   : > { %4358 = vst [vmem:[#allocation52_spill] sm:$0xff] %v4357_v50  ;;  %v940_v39 = vunpack.c.0.s8 %v876_v30  ;;  %vm813_vm10 = vnez %v748_v23  ;;  %v1589_v20 = vadd.f32 %v1588_v33, %v1201_v35  ;;  %1387 = vst [vmem:[%s2337_s24 + $0x1e0] sm:$0xff] %v1195_v47  ;;  %v1578_v16 = vadd.f32 %v1577_v54, %v1195_v47  ;;  %v422_v30 = vld [vmem:[%s2285_s7 + $0x238] sm:$0xff]  ;;  %v423_v23 = vld [vmem:[%s2285_s7 + $0x240] sm:$0xff] }
 0x118   : > { %v877_v24 = vsel %vm813_vm10, 16843009, %v4319_v18  ;;  %vm814_vm4 = vnez %v750_v49  ;;  %v1202_v25 = vsel %vm2331_vm11, %v418_v13, 0.0  ;;  %v424_v33 = vld [vmem:[%s2285_s7 + $0x248] sm:$0xff]  ;;  %v4359_v35 = vmov 0  ;;  %v425_v47 = vld [vmem:[%s2285_s7 + $0x250] sm:$0xff] }
 0x119   : > { %vm2943_vm9 = vcmp.ne.s32.totalorder %v940_v39, 0  ;;  %v941_v42 = vunpack.c.0.s8 %v877_v24  ;;  %v878_v54 = vsel %vm814_vm4, 16843009, %v4319_v18  ;;  %1394 = vst [vmem:[%s2337_s24 + $0x218] sm:$0xff] %v1202_v25  ;;  %v1590_v49 = vadd.f32 %v1589_v20, %v1202_v25  ;;  %v426_v13 = vld [vmem:[%s2285_s7 + $0x258] sm:$0xff]  ;;  %v429_v20 = vld [vmem:[%s2285_s7 + $0x270] sm:$0xff] }
 0x11a   : > { %v4360_v35 = vsel %vm2943_vm9, 4294967295, %v4359_v35  ;;  %v1196_v50 = vsel %vm2943_vm9, %v412_v41, 0.0  ;;  %v942_v39 = vunpack.c.0.s8 %v878_v54  ;;  %v1203_v24 = vsel %vm2349_vm14, %v419_v14, 0.0  ;;  %v430_v25 = vld [vmem:[%s2285_s7 + $0x278] sm:$0xff]  ;;  %v432_v54 = vld [vmem:[%s2285_s7 + $0x288] sm:$0xff] }
 0x11b   : > { %4361 = vst [vmem:[#allocation53_spill] sm:$0xff] %v4360_v35  ;;  %v1204_v18 = vsel %vm2359_vm0, %v420_v44, 0.0  ;;  %1388 = vst [vmem:[%s2337_s24 + $0x1e8] sm:$0xff] %v1196_v50  ;;  %v1579_v36 = vadd.f32 %v1578_v16, %v1196_v50  ;;  %vm2962_vm10 = vcmp.ne.s32.totalorder %v941_v42, 0  ;;  %v4362_v35 = vmov 0  ;;  %v431_v44 = vld [vmem:[%s2285_s7 + $0x280] sm:$0xff] }
 0x11c   : > { %v4363_v35 = vsel %vm2962_vm10, 4294967295, %v4362_v35  ;;  %1395 = vst [vmem:[%s2337_s24 + $0x220] sm:$0xff] %v1203_v24  ;;  %v1591_v41 = vadd.f32 %v1590_v49, %v1203_v24  ;;  %1396 = vst [vmem:[%s2337_s24 + $0x228] sm:$0xff] %v1204_v18  ;;  %v1205_v14 = vsel %vm2367_vm1, %v421_v58, 0.0  ;;  %v1197_v42 = vsel %vm2962_vm10, %v413_v52, 0.0  ;;  %v435_v49 = vld [vmem:[%s2285_s7 + $0x2a0] sm:$0xff] }
 0x11d   : > { %4364 = vst [vmem:[#allocation54_spill] sm:$0xff] %v4363_v35  ;;  %vm2976_vm4 = vcmp.ne.s32.totalorder %v942_v39, 0  ;;  %v4365_v50 = vmov 0  ;;  %1397 = vst [vmem:[%s2337_s24 + $0x230] sm:$0xff] %v1205_v14  ;;  %v1206_v58 = vsel %vm2379_vm2, %v422_v30, 0.0  ;;  %v2985_v16 = vsel %vm2392_vm12, %v423_v23, 0.0 }
 0x11e   : > { %v4366_v50 = vsel %vm2976_vm4, 4294967295, %v4365_v50  ;;  %v436_v24 = vld [vmem:[%s2285_s7 + $0x2a8] sm:$0xff]  ;;  %1389 = vst [vmem:[%s2337_s24 + $0x1f0] sm:$0xff] %v1197_v42  ;;  %v1580_v52 = vadd.f32 %v1579_v36, %v1197_v42  ;;  %v1198_v39 = vsel %vm2976_vm4, %v414_v43, 0.0  ;;  %v1592_v8 = vadd.f32 %v1591_v41, %v1204_v18  ;;  %1398 = vst [vmem:[%s2337_s24 + $0x238] sm:$0xff] %v1206_v58  ;;  %v437_v23 = vld [vmem:[%s2285_s7 + $0x2b0] sm:$0xff] }
 0x11f   : > { %4367 = vst [vmem:[#allocation55_spill] sm:$0xff] %v4366_v50  ;;  %1399 = vst [vmem:[%s2337_s24 + $0x240] sm:$0xff] %v2985_v16  ;;  %v2997_v30 = vsel %vm2399_vm15, %v424_v33, 0.0  ;;  %v439_v36 = vld [vmem:[%s2285_s7 + $0x2c0] sm:$0xff]  ;;  %v440_v42 = vld [vmem:[%s2285_s7 + $0x2c8] sm:$0xff]  ;;  %v3008_v43 = vsel %vm2410_vm3, %v425_v47, 0.0  ;;  %vm4368_vm12 = vnez %v4227_v62  ;;  %vm4369_vm15 = vnez %v4229_v15 }
 0x120   : > { %1390 = vst [vmem:[%s2337_s24 + $0x1f8] sm:$0xff] %v1198_v39  ;;  %1400 = vst [vmem:[%s2337_s24 + $0x248] sm:$0xff] %v2997_v30  ;;  %v3012_v33 = vsel %vm4368_vm12, %v426_v13, 0.0  ;;  %v3016_v18 = vsel %vm4369_vm15, %v427_v48, 0.0  ;;  %vm4370_vm2 = vnez %v4231_v26  ;;  %v1581_v47 = vadd.f32 %v1580_v52, %v1198_v39  ;;  %v444_v13 = vld [vmem:[%s2285_s7 + $0x2e8] sm:$0xff]  ;;  %v446_v52 = vld [vmem:[%s2285_s7 + $0x2f8] sm:$0xff] }
 0x121   : > { %v3020_v41 = vsel %vm4370_vm2, %v428_v2, 0.0  ;;  %v1593_v17 = vadd.f32 %v1592_v8, %v1205_v14  ;;  %1401 = vst [vmem:[%s2337_s24 + $0x250] sm:$0xff] %v3008_v43  ;;  %1402 = vst [vmem:[%s2337_s24 + $0x258] sm:$0xff] %v3012_v33  ;;  %vm4371_vm15 = vnez %v4234_v37  ;;  %vm4372_vm2 = vnez %v4237_v46  ;;  %v443_v8 = vld [vmem:[%s2285_s7 + $0x2e0] sm:$0xff]  ;;  %v445_v14 = vld [vmem:[%s2285_s7 + $0x2f0] sm:$0xff] }
 0x122   : > { %1403 = vst [vmem:[%s2337_s24 + $0x260] sm:$0xff] %v3016_v18  ;;  %1404 = vst [vmem:[%s2337_s24 + $0x268] sm:$0xff] %v3020_v41  ;;  %v3034_v48 = vsel %vm4371_vm15, %v429_v20, 0.0  ;;  %v3038_v2 = vsel %vm4372_vm2, %v430_v25, 0.0  ;;  %vm4373_vm15 = vnez %v4240_v63  ;;  %vm4374_vm2 = vnez %v4243_v4  ;;  %v447_v63 = vld [vmem:[%s2285_s7 + $0x300] sm:$0xff]  ;;  %v448_v37 = vld [vmem:[%s2285_s7 + $0x308] sm:$0xff] }
 0x123   : > { %1405 = vst [vmem:[%s2337_s24 + $0x270] sm:$0xff] %v3034_v48  ;;  %1406 = vst [vmem:[%s2337_s24 + $0x278] sm:$0xff] %v3038_v2  ;;  %v3050_v20 = vsel %vm4373_vm15, %v431_v44, 0.0  ;;  %v3054_v25 = vsel %vm4374_vm2, %v432_v54, 0.0  ;;  %vm4375_vm12 = vnez %v4246_v31  ;;  %vm4377_vm3 = vnez %v4248_v32  ;;  %v450_v54 = vld [vmem:[%s2285_s7 + $0x318] sm:$0xff]  ;;  %v452_v32 = vld [vmem:[%s2285_s7 + $0x328] sm:$0xff] }
 0x124   : > { %v3058_v39 = vsel %vm4375_vm12, %v433_v3, 0.0  ;;  %v3062_v46 = vsel %vm4377_vm3, %v434_v57, 0.0  ;;  %v1582_v44 = vrot.slane %v1581_v47, 4  ;;  %v1594_v26 = vadd.f32 %v1593_v17, %v1206_v58  ;;  %1407 = vst [vmem:[%s2337_s24 + $0x280] sm:$0xff] %v3050_v20  ;;  %1408 = vst [vmem:[%s2337_s24 + $0x288] sm:$0xff] %v3054_v25  ;;  %v449_v17 = vld [vmem:[%s2285_s7 + $0x310] sm:$0xff] }
 0x125   : > { %4376 = vst [vmem:[#allocation56_spill] sm:$0xff] %v3058_v39  ;;  %4378 = vst [vmem:[#allocation57_spill] sm:$0xff] %v3062_v46  ;;  %vm4379_vm12 = vnez %v4251_v60  ;;  %vm4381_vm3 = vnez %v4253_v7  ;;  %v451_v58 = vld [vmem:[%s2285_s7 + $0x320] sm:$0xff]  ;;  %vm4387_vm2 = vnez %v4261_v1  ;;  %vm4389_vm15 = vnez %v4263_v5  ;;  %v4481_v35 = vld [vmem:[#allocation18_spill] sm:$0xff] }
 0x126   : > { %1409 = vst [vmem:[%s2337_s24 + $0x290] sm:$0xff] %v3058_v39  ;;  %1410 = vst [vmem:[%s2337_s24 + $0x298] sm:$0xff] %v3062_v46  ;;  %v3076_v3 = vsel %vm4379_vm12, %v435_v49, 0.0  ;;  %v3080_v57 = vsel %vm4381_vm3, %v436_v24, 0.0  ;;  %vm4383_vm12 = vnez %v4255_v9  ;;  %vm4385_vm3 = vnez %v4258_v19  ;;  %v454_v39 = vld [vmem:[%s2285_s7 + $0x338] sm:$0xff] }
 0x127   : > { %4380 = vst [vmem:[#allocation58_spill] sm:$0xff] %v3076_v3  ;;  %4382 = vst [vmem:[#allocation59_spill] sm:$0xff] %v3080_v57  ;;  %v3092_v49 = vsel %vm4383_vm12, %v437_v23, 0.0  ;;  %v3096_v24 = vsel %vm4385_vm3, %v438_v38, 0.0  ;;  %v3100_v46 = vsel %vm4387_vm2, %v439_v36, 0.0  ;;  %v1583_v9 = vadd.f32 %v1582_v44, %v1581_v47  ;;  %v490_v50 = vld [vmem:[%s2285_s7 + $0x458] sm:$0xff] }
 0x128   : > { %1411 = vst [vmem:[%s2337_s24 + $0x2a0] sm:$0xff] %v3076_v3  ;;  %1412 = vst [vmem:[%s2337_s24 + $0x2a8] sm:$0xff] %v3080_v57  ;;  %v3104_v3 = vsel %vm4389_vm15, %v440_v42, 0.0  ;;  %v453_v57 = vld [vmem:[%s2285_s7 + $0x330] sm:$0xff]  ;;  %v1595_v23 = vadd.f32 %v1594_v26, %v2985_v16  ;;  %vm4391_vm2 = vnez %v4265_v6  ;;  %vm4393_vm15 = vnez %v4268_v29  ;;  %v455_v26 = vld [vmem:[%s2285_s7 + $0x340] sm:$0xff] }
 0x129   : > { %4384 = vst [vmem:[#allocation60_spill] sm:$0xff] %v3092_v49  ;;  %4386 = vst [vmem:[#allocation61_spill] sm:$0xff] %v3096_v24  ;;  %v3119_v38 = vsel %vm4391_vm2, %v441_v55, 0.0  ;;  %v3123_v36 = vsel %vm4393_vm15, %v442_v45, 0.0  ;;  %v456_v16 = vld [vmem:[%s2285_s7 + $0x348] sm:$0xff]  ;;  %v457_v42 = vld [vmem:[%s2285_s7 + $0x350] sm:$0xff]  ;;  %vm4395_vm3 = vnez %v4270_v11  ;;  %vm4397_vm2 = vnez %v4272_v53 }
 0x12a   : > { %4388 = vst [vmem:[#allocation62_spill] sm:$0xff] %v3100_v46  ;;  %4390 = vst [vmem:[#allocation63_spill] sm:$0xff] %v3104_v3  ;;  %v3134_v55 = vsel %vm4395_vm3, %v443_v8, 0.0  ;;  %v3138_v45 = vsel %vm4397_vm2, %v444_v13, 0.0  ;;  %vm4399_vm15 = vnez %v4274_v61  ;;  %vm4401_vm12 = vnez %v4276_v22 }
 0x12b   : > { %1413 = vst [vmem:[%s2337_s24 + $0x2b0] sm:$0xff] %v3092_v49  ;;  %1414 = vst [vmem:[%s2337_s24 + $0x2b8] sm:$0xff] %v3096_v24  ;;  %v3142_v47 = vsel %vm4399_vm15, %v445_v14, 0.0  ;;  %v3146_v44 = vsel %vm4401_vm12, %v446_v52, 0.0  ;;  %v1596_v8 = vadd.f32 %v1595_v23, %v2997_v30  ;;  %vm4403_vm15 = vnez %v4278_v56  ;;  %v460_v30 = vld [vmem:[%s2285_s7 + $0x368] sm:$0xff]  ;;  %v461_v52 = vld [vmem:[%s2285_s7 + $0x370] sm:$0xff] }
 0x12c   : > { %1415 = vst [vmem:[%s2337_s24 + $0x2c0] sm:$0xff] %v3100_v46  ;;  %1416 = vst [vmem:[%s2337_s24 + $0x2c8] sm:$0xff] %v3104_v3  ;;  %v1584_v3 = vrot.slane %v1583_v9, 2  ;;  %v3161_v13 = vsel %vm4403_vm15, %v447_v63, 0.0  ;;  %vm4405_vm12 = vnez %v4280_v10  ;;  %v462_v23 = vld [vmem:[%s2285_s7 + $0x378] sm:$0xff]  ;;  %vm4407_vm2 = vnez %v4282_v28  ;;  %v479_v24 = vld [vmem:[%s2285_s7 + $0x400] sm:$0xff] }
 0x12d   : > { %4392 = vst [vmem:[#allocation64_spill] sm:$0xff] %v3119_v38  ;;  %4394 = vst [vmem:[#allocation65_spill] sm:$0xff] %v3123_v36  ;;  %v3165_v14 = vsel %vm4405_vm12, %v448_v37, 0.0  ;;  %v3176_v63 = vsel %vm4407_vm2, %v449_v17, 0.0  ;;  %vm4409_vm15 = vnez %v4284_v27  ;;  %vm4411_vm12 = vnez %v4287_v12  ;;  %v480_v49 = vld [vmem:[%s2285_s7 + $0x408] sm:$0xff] }
 0x12e   : > { %1417 = vst [vmem:[%s2337_s24 + $0x2d0] sm:$0xff] %v3119_v38  ;;  %1418 = vst [vmem:[%s2337_s24 + $0x2d8] sm:$0xff] %v3123_v36  ;;  %v458_v36 = vld [vmem:[%s2285_s7 + $0x358] sm:$0xff]  ;;  %v459_v38 = vld [vmem:[%s2285_s7 + $0x360] sm:$0xff]  ;;  %v3180_v37 = vsel %vm4409_vm15, %v450_v54, 0.0  ;;  %vm4413_vm3 = vnez %v4289_v34  ;;  %v1597_v17 = vadd.f32 %v1596_v8, %v3008_v43 }
 0x12f   : > { %4396 = vst [vmem:[#allocation66_spill] sm:$0xff] %v3134_v55  ;;  %4398 = vst [vmem:[#allocation67_spill] sm:$0xff] %v3138_v45  ;;  %v465_v43 = vld [vmem:[%s2285_s7 + $0x390] sm:$0xff]  ;;  %v467_v54 = vld [vmem:[%s2285_s7 + $0x3a0] sm:$0xff] }
 0x130   : > { %4400 = vst [vmem:[#allocation68_spill] sm:$0xff] %v3142_v47  ;;  %4402 = vst [vmem:[#allocation69_spill] sm:$0xff] %v3146_v44  ;;  %v4422_v8 = vld [vmem:[#allocation35_spill] sm:$0xff] }
 0x131   : > { %1419 = vst [vmem:[%s2337_s24 + $0x2e0] sm:$0xff] %v3134_v55  ;;  %1420 = vst [vmem:[%s2337_s24 + $0x2e8] sm:$0xff] %v3138_v45  ;;  %v1585_v45 = vadd.f32 %v1584_v3, %v1583_v9  ;;  %v466_v3 = vld [vmem:[%s2285_s7 + $0x398] sm:$0xff] }
 0x132   : > { %1421 = vst [vmem:[%s2337_s24 + $0x2f0] sm:$0xff] %v3142_v47  ;;  %1422 = vst [vmem:[%s2337_s24 + $0x2f8] sm:$0xff] %v3146_v44  ;;  %v3184_v44 = vsel %vm4411_vm12, %v451_v58, 0.0  ;;  %v464_v47 = vld [vmem:[%s2285_s7 + $0x388] sm:$0xff]  ;;  %vm4415_vm12 = vnez %v4291_v51 }
 0x133   : > { %4404 = vst [vmem:[#allocation70_spill] sm:$0xff] %v3161_v13  ;;  %4406 = vst [vmem:[#allocation71_spill] sm:$0xff] %v3165_v14  ;;  %v4419_v58 = vld [vmem:[#allocation34_spill] sm:$0xff]  ;;  %v1586_v55 = vrot.slane %v1585_v45, 1 }
 0x134   : > { %1423 = vst [vmem:[%s2337_s24 + $0x300] sm:$0xff] %v3161_v13  ;;  %1424 = vst [vmem:[%s2337_s24 + $0x308] sm:$0xff] %v3165_v14  ;;  %v3188_v13 = vsel %vm4413_vm3, %v452_v32, 0.0  ;;  %v463_v14 = vld [vmem:[%s2285_s7 + $0x380] sm:$0xff]  ;;  %v3203_v32 = vsel %vm4415_vm12, %v453_v57, 0.0  ;;  %vm4417_vm3 = vnez %v4293_v0  ;;  %vm4420_vm15 = vnez %v4419_v58 }
 0x135   : > { %4408 = vst [vmem:[#allocation72_spill] sm:$0xff] %v3176_v63  ;;  %4410 = vst [vmem:[#allocation73_spill] sm:$0xff] %v3180_v37  ;;  %v3207_v9 = vsel %vm4417_vm3, %v454_v39, 0.0  ;;  %v3218_v57 = vsel %vm4420_vm15, %v455_v26, 0.0  ;;  %vm4423_vm12 = vnez %v4422_v8  ;;  %v1598_v26 = vadd.f32 %v1597_v17, %v3012_v33  ;;  %v470_v33 = vld [vmem:[%s2285_s7 + $0x3b8] sm:$0xff]  ;;  %v471_v17 = vld [vmem:[%s2285_s7 + $0x3c0] sm:$0xff] }
 0x136   : > { %4412 = vst [vmem:[#allocation74_spill] sm:$0xff] %v3184_v44  ;;  %4414 = vst [vmem:[#allocation75_spill] sm:$0xff] %v3188_v13  ;;  %v3222_v39 = vsel %vm4423_vm12, %v456_v16, 0.0  ;;  %v4431_v16 = vld [vmem:[#allocation38_spill] sm:$0xff] }
 0x137   : > { %1425 = vst [vmem:[%s2337_s24 + $0x310] sm:$0xff] %v3176_v63  ;;  %1426 = vst [vmem:[%s2337_s24 + $0x318] sm:$0xff] %v3180_v37  ;;  %v4428_v37 = vld [vmem:[#allocation37_spill] sm:$0xff]  ;;  %v469_v63 = vld [vmem:[%s2285_s7 + $0x3b0] sm:$0xff] }
 0x138   : > { %1427 = vst [vmem:[%s2337_s24 + $0x320] sm:$0xff] %v3184_v44  ;;  %1428 = vst [vmem:[%s2337_s24 + $0x328] sm:$0xff] %v3188_v13  ;;  %v4425_v13 = vld [vmem:[#allocation36_spill] sm:$0xff]  ;;  %vm4429_vm2 = vnez %v4428_v37 }
 0x139   : > { %4416 = vst [vmem:[#allocation76_spill] sm:$0xff] %v3203_v32  ;;  %4418 = vst [vmem:[#allocation77_spill] sm:$0xff] %v3207_v9  ;;  %vm4426_vm3 = vnez %v4425_v13 }
 0x13a   : > { %1429 = vst [vmem:[%s2337_s24 + $0x330] sm:$0xff] %v3203_v32  ;;  %1430 = vst [vmem:[%s2337_s24 + $0x338] sm:$0xff] %v3207_v9  ;;  %v3226_v44 = vsel %vm4426_vm3, %v457_v42, 0.0  ;;  %v3230_v32 = vsel %vm4429_vm2, %v458_v36, 0.0  ;;  %v468_v9 = vld [vmem:[%s2285_s7 + $0x3a8] sm:$0xff]  ;;  %vm4432_vm2 = vnez %v4431_v16  ;;  %v4434_v42 = vld [vmem:[#allocation39_spill] sm:$0xff] }
 0x13b   : > { %4421 = vst [vmem:[#allocation34_spill] sm:$0xff] %v3218_v57  ;;  %4424 = vst [vmem:[#allocation35_spill] sm:$0xff] %v3222_v39  ;;  %v3245_v36 = vsel %vm4432_vm2, %v459_v38, 0.0  ;;  %vm4435_vm3 = vnez %v4434_v42  ;;  %v4440_v38 = vld [vmem:[#allocation41_spill] sm:$0xff] }
 0x13c   : > { %4427 = vst [vmem:[#allocation36_spill] sm:$0xff] %v3226_v44  ;;  %4430 = vst [vmem:[#allocation37_spill] sm:$0xff] %v3230_v32  ;;  %v3249_v46 = vsel %vm4435_vm3, %v460_v30, 0.0  ;;  %vm4441_vm2 = vnez %v4440_v38  ;;  %vm4444_vm3 = vnez %v4324_v59  ;;  %v3278_v38 = vadd.f32 %v1586_v55, %v1585_v45  ;;  %v4450_v55 = vld [vmem:[#allocation43_spill] sm:$0xff]  ;;  %v475_v45 = vld [vmem:[%s2285_s7 + $0x3e0] sm:$0xff] }
 0x13d   : > { %1431 = vst [vmem:[%s2337_s24 + $0x340] sm:$0xff] %v3218_v57  ;;  %1432 = vst [vmem:[%s2337_s24 + $0x348] sm:$0xff] %v3222_v39  ;;  %v472_v39 = vld [vmem:[%s2285_s7 + $0x3c8] sm:$0xff]  ;;  %v3264_v30 = vsel %vm4441_vm2, %v462_v23, 0.0  ;;  %v3268_v57 = vsel %vm2801_vm13, %v463_v14, 0.0  ;;  %v1599_v23 = vadd.f32 %v1598_v26, %v3016_v18  ;;  %vm4451_vm13 = vnez %v4450_v55  ;;  %v4462_v55 = vld [vmem:[#allocation47_spill] sm:$0xff] }
 0x13e   : > { %1433 = vst [vmem:[%s2337_s24 + $0x350] sm:$0xff] %v3226_v44  ;;  %1434 = vst [vmem:[%s2337_s24 + $0x358] sm:$0xff] %v3230_v32  ;;  %v4437_v32 = vld [vmem:[#allocation40_spill] sm:$0xff]  ;;  %v3295_v18 = vsel %vm4451_vm13, %v466_v3, 0.0  ;;  %v476_v26 = vld [vmem:[%s2285_s7 + $0x3e8] sm:$0xff] }
 0x13f   : > { %4433 = vst [vmem:[#allocation38_spill] sm:$0xff] %v3245_v36  ;;  %4436 = vst [vmem:[#allocation39_spill] sm:$0xff] %v3249_v46  ;;  %vm4438_vm12 = vnez %v4437_v32  ;;  %v4459_v3 = vld [vmem:[#allocation46_spill] sm:$0xff] }
 0x140   : > { %1435 = vst [vmem:[%s2337_s24 + $0x360] sm:$0xff] %v3245_v36  ;;  %1436 = vst [vmem:[%s2337_s24 + $0x368] sm:$0xff] %v3249_v46  ;;  %v3260_v44 = vsel %vm4438_vm12, %v461_v52, 0.0  ;;  %v3272_v36 = vsel %vm4444_vm3, %v464_v47, 0.0  ;;  %v473_v46 = vld [vmem:[%s2285_s7 + $0x3d0] sm:$0xff]  ;;  %v474_v52 = vld [vmem:[%s2285_s7 + $0x3d8] sm:$0xff]  ;;  %vm4460_vm13 = vnez %v4459_v3 }
 0x141   : > { %4439 = vst [vmem:[#allocation40_spill] sm:$0xff] %v3260_v44  ;;  %4442 = vst [vmem:[#allocation78_spill] sm:$0xff] %v3264_v30  ;;  %v4447_v47 = vld [vmem:[#allocation42_spill] sm:$0xff] }
 0x142   : > { %4443 = vst [vmem:[#allocation79_spill] sm:$0xff] %v3268_v57  ;;  %4445 = vst [vmem:[#allocation80_spill] sm:$0xff] %v3272_v36  ;;  %vm4448_vm3 = vnez %v4447_v47 }
 0x143   : > { %4446 = vst [vmem:[#allocation81_spill] sm:$0xff] %v3278_v38  ;;  %1437 = vst [vmem:[%s2337_s24 + $0x370] sm:$0xff] %v3260_v44  ;;  %v3291_v14 = vsel %vm4448_vm3, %v465_v43, 0.0  ;;  %v477_v38 = vld [vmem:[%s2285_s7 + $0x3f0] sm:$0xff]  ;;  %v4456_v43 = vld [vmem:[#allocation45_spill] sm:$0xff]  ;;  %v3314_v44 = vsel %vm4460_vm13, %v469_v63, 0.0 }
 0x144   : > { %1438 = vst [vmem:[%s2337_s24 + $0x378] sm:$0xff] %v3264_v30  ;;  %1439 = vst [vmem:[%s2337_s24 + $0x380] sm:$0xff] %v3268_v57  ;;  %vm4457_vm3 = vnez %v4456_v43  ;;  %v4569_v43 = vld [vmem:[#allocation55_spill] sm:$0xff] }
 0x145   : > { %1440 = vst [vmem:[%s2337_s24 + $0x388] sm:$0xff] %v3272_v36  ;;  %4449 = vst [vmem:[#allocation42_spill] sm:$0xff] %v3291_v14  ;;  %v4453_v36 = vld [vmem:[#allocation44_spill] sm:$0xff]  ;;  %v3310_v30 = vsel %vm4457_vm3, %v468_v9, 0.0  ;;  %v3333_v9 = vsel %vm2880_vm8, %v471_v17, 0.0 }
 0x146   : > { %4452 = vst [vmem:[#allocation82_spill] sm:$0xff] %v3295_v18  ;;  %1441 = vst [vmem:[%s2337_s24 + $0x390] sm:$0xff] %v3291_v14  ;;  %vm4454_vm2 = vnez %v4453_v36  ;;  %v3318_v14 = vsel %vm2865_vm7, %v470_v33, 0.0  ;;  %v481_v36 = vld [vmem:[%s2285_s7 + $0x410] sm:$0xff]  ;;  %vm4466_vm7 = vnez %v4348_v40  ;;  %v3362_v40 = vsel %vm2943_vm9, %v476_v26, 0.0  ;;  %v498_v17 = vld [vmem:[%s2285_s7 + $0x498] sm:$0xff] }
 0x147   : > { %1442 = vst [vmem:[%s2337_s24 + $0x398] sm:$0xff] %v3295_v18  ;;  %v3306_v57 = vsel %vm4454_vm2, %v467_v54, 0.0  ;;  %4458 = vst [vmem:[#allocation45_spill] sm:$0xff] %v3310_v30  ;;  %v478_v18 = vld [vmem:[%s2285_s7 + $0x3f8] sm:$0xff]  ;;  %v1600_v54 = vadd.f32 %v1599_v23, %v3020_v41  ;;  %v3337_v33 = vsel %vm4466_vm7, %v472_v39, 0.0  ;;  %v4468_v41 = vld [vmem:[#allocation50_spill] sm:$0xff]  ;;  %vm4482_vm9 = vnez %v4481_v35 }
 0x148   : > { %4455 = vst [vmem:[#allocation83_spill] sm:$0xff] %v3306_v57  ;;  %4461 = vst [vmem:[#allocation46_spill] sm:$0xff] %v3314_v44  ;;  %vm4469_vm13 = vnez %v4468_v41  ;;  %v3354_v39 = vsel %vm2905_vm5, %v474_v52, 0.0  ;;  %v492_v41 = vld [vmem:[%s2285_s7 + $0x468] sm:$0xff] }
 0x149   : > { %4463 = vst [vmem:[#allocation47_spill] sm:$0xff] %v3318_v14  ;;  %1443 = vst [vmem:[%s2337_s24 + $0x3a0] sm:$0xff] %v3306_v57  ;;  %v3341_v23 = vsel %vm4469_vm13, %v473_v46, 0.0  ;;  %v484_v57 = vld [vmem:[%s2285_s7 + $0x428] sm:$0xff]  ;;  %v3358_v46 = vsel %vm2922_vm6, %v475_v45, 0.0  ;;  %v1601_v52 = vadd.f32 %v1600_v54, %v3034_v48  ;;  %v4479_v45 = vld [vmem:[#allocation17_spill] sm:$0xff] }
 0x14a   : > { %1444 = vst [vmem:[%s2337_s24 + $0x3a8] sm:$0xff] %v3310_v30  ;;  %1445 = vst [vmem:[%s2337_s24 + $0x3b0] sm:$0xff] %v3314_v44  ;;  %v482_v30 = vld [vmem:[%s2285_s7 + $0x418] sm:$0xff]  ;;  %v483_v44 = vld [vmem:[%s2285_s7 + $0x420] sm:$0xff]  ;;  %v1264_v48 = vsel %vm4482_vm9, %v480_v49, 0.0 }
 0x14b   : > { %1446 = vst [vmem:[%s2337_s24 + $0x3b8] sm:$0xff] %v3318_v14  ;;  %4465 = vst [vmem:[#allocation84_spill] sm:$0xff] %v3333_v9  ;;  %v487_v54 = vld [vmem:[%s2285_s7 + $0x440] sm:$0xff]  ;;  %v1266_v35 = vsel %vm2331_vm11, %v482_v30, 0.0  ;;  %v1602_v14 = vadd.f32 %v1601_v52, %v3038_v2  ;;  %v3409_v30 = vsel %vm2359_vm0, %v484_v57, 0.0  ;;  %v493_v2 = vld [vmem:[%s2285_s7 + $0x470] sm:$0xff] }
 0x14c   : > { %4467 = vst [vmem:[#allocation85_spill] sm:$0xff] %v3337_v33  ;;  %4470 = vst [vmem:[#allocation86_spill] sm:$0xff] %v3341_v23  ;;  %v494_v52 = vld [vmem:[%s2285_s7 + $0x478] sm:$0xff]  ;;  %v4491_v57 = vld [vmem:[#allocation25_spill] sm:$0xff] }
 0x14d   : > { %1447 = vst [vmem:[%s2337_s24 + $0x3c0] sm:$0xff] %v3333_v9  ;;  %1448 = vst [vmem:[%s2337_s24 + $0x3c8] sm:$0xff] %v3337_v33  ;;  %v3366_v33 = vsel %vm2962_vm10, %v477_v38, 0.0  ;;  %v486_v9 = vld [vmem:[%s2285_s7 + $0x438] sm:$0xff]  ;;  %v3381_v38 = vsel %vm2976_vm4, %v478_v18, 0.0  ;;  %vm4480_vm10 = vnez %v4479_v45  ;;  %v495_v45 = vld [vmem:[%s2285_s7 + $0x480] sm:$0xff]  ;;  %vm4492_vm11 = vnez %v4491_v57 }
 0x14e   : > { %1449 = vst [vmem:[%s2337_s24 + $0x3d0] sm:$0xff] %v3341_v23  ;;  %4472 = vst [vmem:[#allocation87_spill] sm:$0xff] %v3354_v39  ;;  %v485_v23 = vld [vmem:[%s2285_s7 + $0x430] sm:$0xff]  ;;  %v1263_v26 = vsel %vm4480_vm10, %v479_v24, 0.0  ;;  %v1603_v63 = vadd.f32 %v1602_v14, %v3050_v20  ;;  %vm4498_vm10 = vnez %v4229_v15  ;;  %v499_v14 = vld [vmem:[%s2285_s7 + $0x4a0] sm:$0xff] }
 0x14f   : > { %4474 = vst [vmem:[#allocation88_spill] sm:$0xff] %v3358_v46  ;;  %4476 = vst [vmem:[#allocation89_spill] sm:$0xff] %v3362_v40  ;;  %v1657_v18 = vadd.f32 %v1264_v48, %v1263_v26  ;;  %v500_v57 = vld [vmem:[%s2285_s7 + $0x4a8] sm:$0xff] }
 0x150   : > { %4477 = vst [vmem:[#allocation90_spill] sm:$0xff] %v3366_v33  ;;  %1450 = vst [vmem:[%s2337_s24 + $0x3d8] sm:$0xff] %v3354_v39  ;;  %v1267_v39 = vsel %vm2349_vm14, %v483_v44, 0.0  ;;  %v3413_v44 = vsel %vm2367_vm1, %v485_v23, 0.0  ;;  %v3430_v23 = vsel %vm4492_vm11, %v487_v54, 0.0  ;;  %vm4497_vm1 = vnez %v4227_v62  ;;  %v4500_v54 = vld [vmem:[#allocation28_spill] sm:$0xff] }
 0x151   : > { %1451 = vst [vmem:[%s2337_s24 + $0x3e0] sm:$0xff] %v3358_v46  ;;  %1452 = vst [vmem:[%s2337_s24 + $0x3e8] sm:$0xff] %v3362_v40  ;;  %v488_v46 = vld [vmem:[%s2285_s7 + $0x448] sm:$0xff]  ;;  %v489_v40 = vld [vmem:[%s2285_s7 + $0x450] sm:$0xff] }
 0x152   : > { %1453 = vst [vmem:[%s2337_s24 + $0x3f0] sm:$0xff] %v3366_v33  ;;  %4478 = vst [vmem:[#allocation91_spill] sm:$0xff] %v3381_v38  ;;  %v4483_v33 = vld [vmem:[#allocation19_spill] sm:$0xff]  ;;  %v4503_v62 = vld [vmem:[#allocation29_spill] sm:$0xff] }
 0x153   : > { %1454 = vst [vmem:[%s2337_s24 + $0x3f8] sm:$0xff] %v3381_v38  ;;  %1455 = vst [vmem:[%s2337_s24 + $0x400] sm:$0xff] %v1263_v26  ;;  %vm4484_vm4 = vnez %v4483_v33  ;;  %v491_v38 = vld [vmem:[%s2285_s7 + $0x460] sm:$0xff]  ;;  %v4489_v26 = vld [vmem:[#allocation24_spill] sm:$0xff] }
 0x154   : > { %1456 = vst [vmem:[%s2337_s24 + $0x408] sm:$0xff] %v1264_v48  ;;  %v1265_v24 = vsel %vm4484_vm4, %v481_v36, 0.0  ;;  %1458 = vst [vmem:[%s2337_s24 + $0x418] sm:$0xff] %v1266_v35  ;;  %vm4490_vm9 = vnez %v4489_v26  ;;  %v4495_v33 = vld [vmem:[#allocation27_spill] sm:$0xff]  ;;  %vm4501_vm4 = vnez %v4500_v54  ;;  %v503_v54 = vld [vmem:[%s2285_s7 + $0x4c0] sm:$0xff] }
 0x155   : > { %1457 = vst [vmem:[%s2337_s24 + $0x410] sm:$0xff] %v1265_v24  ;;  %1459 = vst [vmem:[%s2337_s24 + $0x420] sm:$0xff] %v1267_v39  ;;  %v3417_v48 = vsel %vm4490_vm9, %v486_v9, 0.0  ;;  %v1658_v49 = vadd.f32 %v1657_v18, %v1265_v24  ;;  %v4493_v9 = vld [vmem:[#allocation26_spill] sm:$0xff]  ;;  %vm4496_vm0 = vnez %v4495_v33  ;;  %v497_v26 = vld [vmem:[%s2285_s7 + $0x490] sm:$0xff]  ;;  %v3460_v20 = vsel %vm4501_vm4, %v492_v41, 0.0 }
 0x156   : > { %1460 = vst [vmem:[%s2337_s24 + $0x428] sm:$0xff] %v3409_v30  ;;  %1461 = vst [vmem:[%s2337_s24 + $0x430] sm:$0xff] %v3413_v44  ;;  %vm4494_vm14 = vnez %v4493_v9  ;;  %v3438_v18 = vsel %vm4496_vm0, %v489_v40, 0.0  ;;  %v496_v24 = vld [vmem:[%s2285_s7 + $0x488] sm:$0xff]  ;;  %v3452_v40 = vsel %vm4497_vm1, %v490_v50, 0.0  ;;  %v501_v9 = vld [vmem:[%s2285_s7 + $0x4b0] sm:$0xff]  ;;  %vm4504_vm9 = vnez %v4503_v62 }
 0x157   : > { %1462 = vst [vmem:[%s2337_s24 + $0x438] sm:$0xff] %v3417_v48  ;;  %v3434_v36 = vsel %vm4494_vm14, %v488_v46, 0.0  ;;  %1463 = vst [vmem:[%s2337_s24 + $0x440] sm:$0xff] %v3430_v23  ;;  %v3456_v46 = vsel %vm4498_vm10, %v491_v38, 0.0  ;;  %v1659_v33 = vadd.f32 %v1658_v49, %v1266_v35  ;;  %v3473_v15 = vsel %vm4504_vm9, %v493_v2, 0.0  ;;  %v4505_v50 = vld [vmem:[#allocation30_spill] sm:$0xff] }
 0x158   : > { %1464 = vst [vmem:[%s2337_s24 + $0x448] sm:$0xff] %v3434_v36  ;;  %1465 = vst [vmem:[%s2337_s24 + $0x450] sm:$0xff] %v3438_v18  ;;  %vm4506_vm11 = vnez %v4505_v50  ;;  %v4507_v38 = vld [vmem:[#allocation31_spill] sm:$0xff]  ;;  %v502_v49 = vld [vmem:[%s2285_s7 + $0x4b8] sm:$0xff]  ;;  %vm4509_vm0 = vnez %v4243_v4  ;;  %vm4510_vm1 = vnez %v4246_v31  ;;  %vm4514_vm4 = vnez %v4251_v60 }
 0x159   : > { %4499 = vst [vmem:[#allocation17_spill] sm:$0xff] %v3456_v46  ;;  %4502 = vst [vmem:[#allocation18_spill] sm:$0xff] %v3460_v20  ;;  %v3477_v41 = vsel %vm4506_vm11, %v494_v52, 0.0  ;;  %vm4508_vm14 = vnez %v4507_v38  ;;  %v3495_v2 = vsel %vm4509_vm0, %v496_v24, 0.0  ;;  %v3499_v52 = vsel %vm4510_vm1, %v497_v26, 0.0  ;;  %v506_v62 = vld [vmem:[%s2285_s7 + $0x4d8] sm:$0xff] }
 0x15a   : > { %1466 = vst [vmem:[%s2337_s24 + $0x458] sm:$0xff] %v3452_v40  ;;  %1467 = vst [vmem:[%s2337_s24 + $0x460] sm:$0xff] %v3456_v46  ;;  %v3481_v35 = vsel %vm4508_vm14, %v495_v45, 0.0  ;;  %v504_v46 = vld [vmem:[%s2285_s7 + $0x4c8] sm:$0xff]  ;;  %v4511_v45 = vld [vmem:[#allocation32_spill] sm:$0xff]  ;;  %v1660_v38 = vadd.f32 %v1659_v33, %v1267_v39  ;;  %v3516_v4 = vsel %vm4514_vm4, %v499_v14, 0.0  ;;  %vm4515_vm9 = vnez %v4253_v7 }
 0x15b   : > { %1468 = vst [vmem:[%s2337_s24 + $0x468] sm:$0xff] %v3460_v20  ;;  %v1604_v20 = vadd.f32 %v1603_v63, %v3054_v25  ;;  %1469 = vst [vmem:[%s2337_s24 + $0x470] sm:$0xff] %v3473_v15  ;;  %vm4512_vm10 = vnez %v4511_v45  ;;  %v505_v63 = vld [vmem:[%s2285_s7 + $0x4d0] sm:$0xff]  ;;  %v507_v50 = vld [vmem:[%s2285_s7 + $0x4e0] sm:$0xff]  ;;  %v3520_v31 = vsel %vm4515_vm9, %v500_v57, 0.0  ;;  %vm4519_vm14 = vnez %v4258_v19 }
 0x15c   : > { %1470 = vst [vmem:[%s2337_s24 + $0x478] sm:$0xff] %v3477_v41  ;;  %1471 = vst [vmem:[%s2337_s24 + $0x480] sm:$0xff] %v3481_v35  ;;  %v3503_v25 = vsel %vm4512_vm10, %v498_v17, 0.0  ;;  %v4516_v17 = vld [vmem:[#allocation33_spill] sm:$0xff]  ;;  %v508_v24 = vld [vmem:[%s2285_s7 + $0x4e8] sm:$0xff]  ;;  %v3538_v60 = vsel %vm4519_vm14, %v502_v49, 0.0  ;;  %vm4520_vm0 = vnez %v4261_v1  ;;  %vm4521_vm1 = vnez %v4263_v5 }
 0x15d   : > { %4513 = vst [vmem:[#allocation19_spill] sm:$0xff] %v3503_v25  ;;  %1472 = vst [vmem:[%s2337_s24 + $0x488] sm:$0xff] %v3495_v2  ;;  %vm4517_vm11 = vnez %v4516_v17  ;;  %v509_v26 = vld [vmem:[%s2285_s7 + $0x4f0] sm:$0xff]  ;;  %v510_v33 = vld [vmem:[%s2285_s7 + $0x4f8] sm:$0xff]  ;;  %v3542_v7 = vsel %vm4520_vm0, %v503_v54, 0.0  ;;  %v1661_v17 = vadd.f32 %v1660_v38, %v3409_v30  ;;  %vm4522_vm10 = vnez %v4265_v6 }
 0x15e   : > { %1473 = vst [vmem:[%s2337_s24 + $0x490] sm:$0xff] %v3499_v52  ;;  %1474 = vst [vmem:[%s2337_s24 + $0x498] sm:$0xff] %v3503_v25  ;;  %v3524_v39 = vsel %vm4517_vm11, %v501_v9, 0.0  ;;  %v4518_v45 = vld [vmem:[#allocation56_spill] sm:$0xff]  ;;  %v511_v14 = vld [vmem:[%s2285_s7 + $0x500] sm:$0xff]  ;;  %v3560_v19 = vsel %vm4522_vm10, %v505_v63, 0.0  ;;  %vm4523_vm4 = vnez %v4268_v29  ;;  %vm4524_vm9 = vnez %v4270_v11 }
 0x15f   : > { %v1605_v25 = vadd.f32 %v1604_v20, %v4518_v45  ;;  %1475 = vst [vmem:[%s2337_s24 + $0x4a0] sm:$0xff] %v3516_v4  ;;  %1476 = vst [vmem:[%s2337_s24 + $0x4a8] sm:$0xff] %v3520_v31  ;;  %v3546_v20 = vsel %vm4521_vm1, %v504_v46, 0.0  ;;  %v512_v57 = vld [vmem:[%s2285_s7 + $0x508] sm:$0xff]  ;;  %v513_v9 = vld [vmem:[%s2285_s7 + $0x510] sm:$0xff]  ;;  %v3564_v1 = vsel %vm4523_vm4, %v506_v62, 0.0  ;;  %vm4526_vm11 = vnez %v4272_v53 }
 0x160   : > { %1477 = vst [vmem:[%s2337_s24 + $0x4b0] sm:$0xff] %v3524_v39  ;;  %1478 = vst [vmem:[%s2337_s24 + $0x4b8] sm:$0xff] %v3538_v60  ;;  %v3568_v5 = vsel %vm4524_vm9, %v507_v50, 0.0  ;;  %v514_v30 = vld [vmem:[%s2285_s7 + $0x518] sm:$0xff]  ;;  %v515_v46 = vld [vmem:[%s2285_s7 + $0x520] sm:$0xff]  ;;  %v3582_v6 = vsel %vm4526_vm11, %v508_v24, 0.0  ;;  %vm4527_vm14 = vnez %v4274_v61  ;;  %vm4528_vm0 = vnez %v4276_v22 }
 0x161   : > { %1479 = vst [vmem:[%s2337_s24 + $0x4c0] sm:$0xff] %v3542_v7  ;;  %1480 = vst [vmem:[%s2337_s24 + $0x4c8] sm:$0xff] %v3546_v20  ;;  %v516_v49 = vld [vmem:[%s2285_s7 + $0x528] sm:$0xff]  ;;  %v4525_v54 = vld [vmem:[#allocation57_spill] sm:$0xff]  ;;  %v3586_v29 = vsel %vm4527_vm14, %v509_v26, 0.0  ;;  %v3590_v11 = vsel %vm4528_vm0, %v510_v33, 0.0  ;;  %v1662_v50 = vadd.f32 %v1661_v17, %v3413_v44  ;;  %vm4529_vm1 = vnez %v4278_v56 }
 0x162   : > { %v1606_v38 = vadd.f32 %v1605_v25, %v4525_v54  ;;  %1481 = vst [vmem:[%s2337_s24 + $0x4d0] sm:$0xff] %v3560_v19  ;;  %1482 = vst [vmem:[%s2337_s24 + $0x4d8] sm:$0xff] %v3564_v1  ;;  %v517_v25 = vld [vmem:[%s2285_s7 + $0x530] sm:$0xff]  ;;  %v518_v63 = vld [vmem:[%s2285_s7 + $0x538] sm:$0xff]  ;;  %v3604_v53 = vsel %vm4529_vm1, %v511_v14, 0.0  ;;  %vm4530_vm10 = vnez %v4280_v10  ;;  %vm4531_vm4 = vnez %v4282_v28 }
 0x163   : > { %1483 = vst [vmem:[%s2337_s24 + $0x4e0] sm:$0xff] %v3568_v5  ;;  %v519_v62 = vld [vmem:[%s2285_s7 + $0x540] sm:$0xff]  ;;  %1484 = vst [vmem:[%s2337_s24 + $0x4e8] sm:$0xff] %v3582_v6  ;;  %v3608_v61 = vsel %vm4530_vm10, %v512_v57, 0.0  ;;  %v3612_v22 = vsel %vm4531_vm4, %v513_v9, 0.0  ;;  %v520_v44 = vld [vmem:[%s2285_s7 + $0x548] sm:$0xff]  ;;  %vm4533_vm9 = vnez %v4284_v27  ;;  %vm4534_vm11 = vnez %v4287_v12 }
 0x164   : > { %1485 = vst [vmem:[%s2337_s24 + $0x4f0] sm:$0xff] %v3586_v29  ;;  %1486 = vst [vmem:[%s2337_s24 + $0x4f8] sm:$0xff] %v3590_v11  ;;  %v521_v24 = vld [vmem:[%s2285_s7 + $0x550] sm:$0xff]  ;;  %v522_v26 = vld [vmem:[%s2285_s7 + $0x558] sm:$0xff]  ;;  %v3626_v56 = vsel %vm4533_vm9, %v514_v30, 0.0  ;;  %v3630_v10 = vsel %vm4534_vm11, %v515_v46, 0.0  ;;  %vm4535_vm14 = vnez %v4289_v34  ;;  %v1663_v17 = vadd.f32 %v1662_v50, %v3417_v48 }
 0x165   : > { %v4532_v33 = vld [vmem:[#allocation58_spill] sm:$0xff]  ;;  %1487 = vst [vmem:[%s2337_s24 + $0x500] sm:$0xff] %v3604_v53  ;;  %1488 = vst [vmem:[%s2337_s24 + $0x508] sm:$0xff] %v3608_v61  ;;  %v3634_v28 = vsel %vm4535_vm14, %v516_v49, 0.0  ;;  %v523_v14 = vld [vmem:[%s2285_s7 + $0x560] sm:$0xff]  ;;  %vm4536_vm0 = vnez %v4291_v51  ;;  %vm4537_vm1 = vnez %v4293_v0  ;;  %v3656_v34 = vsel %vm4420_vm15, %v519_v62, 0.0 }
 0x166   : > { %v1607_v45 = vadd.f32 %v1606_v38, %v4532_v33  ;;  %1489 = vst [vmem:[%s2337_s24 + $0x510] sm:$0xff] %v3612_v22  ;;  %v524_v57 = vld [vmem:[%s2285_s7 + $0x568] sm:$0xff]  ;;  %v525_v9 = vld [vmem:[%s2285_s7 + $0x570] sm:$0xff]  ;;  %1490 = vst [vmem:[%s2337_s24 + $0x518] sm:$0xff] %v3626_v56  ;;  %v3648_v27 = vsel %vm4536_vm0, %v517_v25, 0.0  ;;  %v3652_v12 = vsel %vm4537_vm1, %v518_v63, 0.0  ;;  %vm4539_vm10 = vnez %v4422_v8 }
 0x167   : > { %1491 = vst [vmem:[%s2337_s24 + $0x520] sm:$0xff] %v3630_v10  ;;  %1492 = vst [vmem:[%s2337_s24 + $0x528] sm:$0xff] %v3634_v28  ;;  %v526_v48 = vld [vmem:[%s2285_s7 + $0x578] sm:$0xff]  ;;  %v527_v30 = vld [vmem:[%s2285_s7 + $0x580] sm:$0xff]  ;;  %v3670_v51 = vsel %vm4539_vm10, %v520_v44, 0.0  ;;  %vm4540_vm15 = vnez %v4425_v13  ;;  %vm4541_vm4 = vnez %v4428_v37  ;;  %v1664_v62 = vadd.f32 %v1663_v17, %v3430_v23 }
 0x168   : > { %v528_v46 = vld [vmem:[%s2285_s7 + $0x588] sm:$0xff]  ;;  %v4538_v49 = vld [vmem:[#allocation59_spill] sm:$0xff]  ;;  %1493 = vst [vmem:[%s2337_s24 + $0x530] sm:$0xff] %v3648_v27  ;;  %1494 = vst [vmem:[%s2337_s24 + $0x538] sm:$0xff] %v3652_v12  ;;  %v3674_v0 = vsel %vm4540_vm15, %v521_v24, 0.0  ;;  %v3678_v58 = vsel %vm4541_vm4, %v522_v26, 0.0  ;;  %vm4542_vm9 = vnez %v4431_v16  ;;  %vm4543_vm11 = vnez %v4434_v42 }
 0x169   : > { %v1608_v54 = vadd.f32 %v1607_v45, %v4538_v49  ;;  %1495 = vst [vmem:[%s2337_s24 + $0x540] sm:$0xff] %v3656_v34  ;;  %v529_v38 = vld [vmem:[%s2285_s7 + $0x590] sm:$0xff]  ;;  %v530_v25 = vld [vmem:[%s2285_s7 + $0x598] sm:$0xff]  ;;  %v531_v63 = vld [vmem:[%s2285_s7 + $0x5a0] sm:$0xff]  ;;  %v3692_v13 = vsel %vm4542_vm9, %v523_v14, 0.0  ;;  %v3696_v37 = vsel %vm4543_vm11, %v524_v57, 0.0  ;;  %vm4548_vm0 = vnez %v4324_v59 }
 0x16a   : > { %1496 = vst [vmem:[%s2337_s24 + $0x548] sm:$0xff] %v3670_v51  ;;  %1497 = vst [vmem:[%s2337_s24 + $0x550] sm:$0xff] %v3674_v0  ;;  %v3700_v8 = vsel %vm4438_vm12, %v525_v9, 0.0  ;;  %v532_v23 = vld [vmem:[%s2285_s7 + $0x5a8] sm:$0xff]  ;;  %v533_v50 = vld [vmem:[%s2285_s7 + $0x5b0] sm:$0xff]  ;;  %vm4547_vm12 = vnez %v4322_v21  ;;  %v3722_v33 = vsel %vm4548_vm0, %v528_v46, 0.0  ;;  %v1665_v9 = vadd.f32 %v1664_v62, %v3434_v36 }
 0x16b   : > { %1498 = vst [vmem:[%s2337_s24 + $0x558] sm:$0xff] %v3678_v58  ;;  %v534_v44 = vld [vmem:[%s2285_s7 + $0x5b8] sm:$0xff]  ;;  %1499 = vst [vmem:[%s2337_s24 + $0x560] sm:$0xff] %v3692_v13  ;;  %v4545_v16 = vld [vmem:[#allocation41_spill] sm:$0xff]  ;;  %v3718_v42 = vsel %vm4547_vm12, %v527_v30, 0.0  ;;  %vm4549_vm1 = vnez %v4447_v47  ;;  %v3744_v36 = vsel %vm4454_vm2, %v531_v63, 0.0  ;;  %vm4554_vm2 = vnez %v4459_v3 }
 0x16c   : > { %v4544_v24 = vld [vmem:[#allocation60_spill] sm:$0xff]  ;;  %1500 = vst [vmem:[%s2337_s24 + $0x568] sm:$0xff] %v3696_v37  ;;  %1501 = vst [vmem:[%s2337_s24 + $0x570] sm:$0xff] %v3700_v8  ;;  %vm4546_vm14 = vnez %v4545_v16  ;;  %v535_v45 = vld [vmem:[%s2285_s7 + $0x5c0] sm:$0xff]  ;;  %v3736_v21 = vsel %vm4549_vm1, %v529_v38, 0.0  ;;  %v3758_v47 = vsel %vm4457_vm3, %v532_v23, 0.0  ;;  %vm4555_vm15 = vnez %v4462_v55 }
 0x16d   : > { %v1609_v26 = vadd.f32 %v1608_v54, %v4544_v24  ;;  %v3714_v32 = vsel %vm4546_vm14, %v526_v48, 0.0  ;;  %v536_v14 = vld [vmem:[%s2285_s7 + $0x5c8] sm:$0xff]  ;;  %v537_v57 = vld [vmem:[%s2285_s7 + $0x5d0] sm:$0xff]  ;;  %1503 = vst [vmem:[%s2337_s24 + $0x580] sm:$0xff] %v3718_v42  ;;  %1504 = vst [vmem:[%s2337_s24 + $0x588] sm:$0xff] %v3722_v33  ;;  %v3762_v38 = vsel %vm4554_vm2, %v533_v50, 0.0 }
 0x16e   : > { %1502 = vst [vmem:[%s2337_s24 + $0x578] sm:$0xff] %v3714_v32  ;;  %v4550_v59 = vld [vmem:[#allocation43_spill] sm:$0xff]  ;;  %v538_v30 = vld [vmem:[%s2285_s7 + $0x5d8] sm:$0xff]  ;;  %v539_v46 = vld [vmem:[%s2285_s7 + $0x5e0] sm:$0xff]  ;;  %v3779_v3 = vsel %vm2880_vm8, %v535_v45, 0.0  ;;  %v3783_v23 = vsel %vm4466_vm7, %v536_v14, 0.0 }
 0x16f   : > { %vm4551_vm10 = vnez %v4550_v59  ;;  %v540_v49 = vld [vmem:[%s2285_s7 + $0x5e8] sm:$0xff]  ;;  %v4553_v54 = vld [vmem:[#allocation61_spill] sm:$0xff]  ;;  %1505 = vst [vmem:[%s2337_s24 + $0x590] sm:$0xff] %v3736_v21  ;;  %1507 = vst [vmem:[%s2337_s24 + $0x5a0] sm:$0xff] %v3744_v36  ;;  %v3802_v59 = vsel %vm2922_vm6, %v539_v46, 0.0  ;;  %vm1733_vm7 = vcmask (!%p1961_p4), 1041409  }
 0x170   : > { %v3740_v17 = vsel %vm4551_vm10, %v530_v25, 0.0  ;;  %v1610_v62 = vadd.f32 %v1609_v26, %v4553_v54  ;;  %v3766_v25 = vsel %vm4555_vm15, %v534_v44, 0.0  ;;  %v541_v63 = vld [vmem:[%s2285_s7 + $0x5f0] sm:$0xff]  ;;  %v542_v24 = vld [vmem:[%s2285_s7 + $0x5f8] sm:$0xff]  ;;  %v1666_v26 = vadd.f32 %v1665_v9, %v3438_v18  ;;  %1508 = vst [vmem:[%s2337_s24 + $0x5a8] sm:$0xff] %v3758_v47  ;;  %1509 = vst [vmem:[%s2337_s24 + $0x5b0] sm:$0xff] %v3762_v38 }
 0x171   : > { %1506 = vst [vmem:[%s2337_s24 + $0x598] sm:$0xff] %v3740_v17  ;;  %1510 = vst [vmem:[%s2337_s24 + $0x5b8] sm:$0xff] %v3766_v25  ;;  %v3787_v18 = vsel %vm4469_vm13, %v537_v57, 0.0  ;;  %v4559_v44 = vld [vmem:[#allocation62_spill] sm:$0xff]  ;;  %v3798_v9 = vsel %vm2905_vm5, %v538_v30, 0.0  ;;  %v4563_v48 = vld [vmem:[#allocation53_spill] sm:$0xff]  ;;  %vm4570_vm13 = vnez %v4569_v43 }
 0x172   : > { %v1611_v16 = vadd.f32 %v1610_v62, %v4559_v44  ;;  %1511 = vst [vmem:[%s2337_s24 + $0x5c0] sm:$0xff] %v3779_v3  ;;  %1512 = vst [vmem:[%s2337_s24 + $0x5c8] sm:$0xff] %v3783_v23  ;;  %vm4564_vm8 = vnez %v4563_v48  ;;  %v1667_v54 = vadd.f32 %v1666_v26, %v3452_v40  ;;  %v4566_v62 = vld [vmem:[#allocation54_spill] sm:$0xff]  ;;  %v3821_v46 = vsel %vm4570_vm13, %v542_v24, 0.0  ;;  %v4572_v55 = vld [vmem:[#allocation63_spill] sm:$0xff] }
 0x173   : > { %1513 = vst [vmem:[%s2337_s24 + $0x5d0] sm:$0xff] %v3787_v18  ;;  %4562 = vst [vmem:[#allocation20_spill] sm:$0xff] %v3802_v59  ;;  %v3806_v57 = vsel %vm4564_vm8, %v540_v49, 0.0  ;;  %vm4567_vm3 = vnez %v4566_v62  ;;  %v4573_v40 = vld [vmem:[#allocation17_spill] sm:$0xff]  ;;  %v4574_v26 = vld [vmem:[#allocation64_spill] sm:$0xff]  ;;  %vm1735_vm5 = vcmask (!%p1961_p4), 1042434  }
 0x174   : > { %4565 = vst [vmem:[#allocation21_spill] sm:$0xff] %v3806_v57  ;;  %1514 = vst [vmem:[%s2337_s24 + $0x5d8] sm:$0xff] %v3798_v9  ;;  %v3817_v30 = vsel %vm4567_vm3, %v541_v63, 0.0  ;;  %v1612_v50 = vadd.f32 %v1611_v16, %v4572_v55  ;;  %v1668_v49 = vadd.f32 %v1667_v54, %v4573_v40  ;;  %v4575_v45 = vld [vmem:[#allocation18_spill] sm:$0xff]  ;;  %v4576_v48 = vld [vmem:[#allocation65_spill] sm:$0xff] }
 0x175   : > { %1515 = vst [vmem:[%s2337_s24 + $0x5e0] sm:$0xff] %v3802_v59  ;;  %1516 = vst [vmem:[%s2337_s24 + $0x5e8] sm:$0xff] %v3806_v57  ;;  %v4577_v57 = vld [vmem:[#allocation66_spill] sm:$0xff]  ;;  %v4578_v59 = vld [vmem:[#allocation67_spill] sm:$0xff] }
 0x176   : > { %4568 = vst [vmem:[#allocation22_spill] sm:$0xff] %v3817_v30  ;;  %4571 = vst [vmem:[#allocation23_spill] sm:$0xff] %v3821_v46  ;;  %v1613_v44 = vadd.f32 %v1612_v50, %v4574_v26  ;;  %v1669_v14 = vadd.f32 %v1668_v49, %v4575_v45  ;;  %v4580_v40 = vld [vmem:[#allocation69_spill] sm:$0xff]  ;;  %v4581_v26 = vld [vmem:[#allocation70_spill] sm:$0xff] }
 0x177   : > { %1517 = vst [vmem:[%s2337_s24 + $0x5f0] sm:$0xff] %v3817_v30  ;;  %1518 = vst [vmem:[%s2337_s24 + $0x5f8] sm:$0xff] %v3821_v46  ;;  %v4579_v30 = vld [vmem:[#allocation68_spill] sm:$0xff]  ;;  %v4582_v45 = vld [vmem:[#allocation19_spill] sm:$0xff] }
 0x178   : > { %v1614_v62 = vadd.f32 %v1613_v44, %v4576_v48  ;;  %v1670_v63 = vadd.f32 %v1669_v14, %v3473_v15  ;;  %v4583_v14 = vld [vmem:[#allocation71_spill] sm:$0xff]  ;;  %v4584_v48 = vld [vmem:[#allocation72_spill] sm:$0xff] }
 0x17a   : > { %v1615_v43 = vadd.f32 %v1614_v62, %v4577_v57  ;;  %v1671_v24 = vadd.f32 %v1670_v63, %v3477_v41  ;;  %v4585_v62 = vld [vmem:[#allocation73_spill] sm:$0xff]  ;;  %v4586_v63 = vld [vmem:[#allocation74_spill] sm:$0xff] }
 0x17c   : > { %v1616_v16 = vadd.f32 %v1615_v43, %v4578_v59  ;;  %v1672_v55 = vadd.f32 %v1671_v24, %v3481_v35  ;;  %v4587_v43 = vld [vmem:[#allocation75_spill] sm:$0xff] }
 0x17e   : > { %v1617_v46 = vadd.f32 %v1616_v16, %v4579_v30  ;;  %v1673_v54 = vadd.f32 %v1672_v55, %v3495_v2  ;;  %v4588_v55 = vld [vmem:[#allocation76_spill] sm:$0xff] }
 0x180   : > { %v1618_v50 = vadd.f32 %v1617_v46, %v4580_v40  ;;  %v1674_v49 = vadd.f32 %v1673_v54, %v3499_v52  ;;  %v4589_v40 = vld [vmem:[#allocation77_spill] sm:$0xff] }
 0x182   : > { %v1619_v44 = vadd.f32 %v1618_v50, %v4581_v26  ;;  %v1675_v15 = vadd.f32 %v1674_v49, %v4582_v45  ;;  %v4590_v49 = vld [vmem:[#allocation34_spill] sm:$0xff] }
 0x184   : > { %v1620_v57 = vadd.f32 %v1619_v44, %v4583_v14  ;;  %v1676_v41 = vadd.f32 %v1675_v15, %v3516_v4  ;;  %v4591_v44 = vld [vmem:[#allocation35_spill] sm:$0xff]  ;;  %v4592_v15 = vld [vmem:[#allocation36_spill] sm:$0xff] }
 0x186   : > { %v1621_v59 = vadd.f32 %v1620_v57, %v4584_v48  ;;  %v1677_v35 = vadd.f32 %v1676_v41, %v3520_v31  ;;  %v4593_v57 = vld [vmem:[#allocation37_spill] sm:$0xff]  ;;  %v4594_v48 = vld [vmem:[#allocation38_spill] sm:$0xff] }
 0x188   : > { %v1622_v30 = vadd.f32 %v1621_v59, %v4585_v62  ;;  %v1678_v2 = vadd.f32 %v1677_v35, %v3524_v39  ;;  %v4595_v35 = vld [vmem:[#allocation39_spill] sm:$0xff] }
 0x18a   : > { %v1623_v46 = vadd.f32 %v1622_v30, %v4586_v63  ;;  %v1679_v52 = vadd.f32 %v1678_v2, %v3538_v60  ;;  %v4596_v30 = vld [vmem:[#allocation40_spill] sm:$0xff]  ;;  %v4597_v63 = vld [vmem:[#allocation78_spill] sm:$0xff] }
 0x18c   : > { %v1624_v24 = vadd.f32 %v1623_v46, %v4587_v43  ;;  %v1680_v16 = vadd.f32 %v1679_v52, %v3542_v7  ;;  %v4598_v52 = vld [vmem:[#allocation79_spill] sm:$0xff] }
 0x18e   : > { %v1625_v54 = vadd.f32 %v1624_v24, %v4588_v55  ;;  %v1681_v4 = vadd.f32 %v1680_v16, %v3546_v20  ;;  %v4599_v24 = vld [vmem:[#allocation80_spill] sm:$0xff]  ;;  %v4600_v55 = vld [vmem:[#allocation42_spill] sm:$0xff] }
 0x190   : > { %v1626_v50 = vadd.f32 %v1625_v54, %v4589_v40  ;;  %v1682_v31 = vadd.f32 %v1681_v4, %v3560_v19  ;;  %v4601_v4 = vld [vmem:[#allocation82_spill] sm:$0xff] }
 0x192   : > { %v1627_v26 = vadd.f32 %v1626_v50, %v4590_v49  ;;  %v1683_v39 = vadd.f32 %v1682_v31, %v3564_v1  ;;  %v4602_v50 = vld [vmem:[#allocation83_spill] sm:$0xff]  ;;  %v4603_v49 = vld [vmem:[#allocation45_spill] sm:$0xff] }
 0x194   : > { %v1628_v45 = vadd.f32 %v1627_v26, %v4591_v44  ;;  %v1684_v60 = vadd.f32 %v1683_v39, %v3568_v5  ;;  %v4604_v39 = vld [vmem:[#allocation46_spill] sm:$0xff] }
 0x196   : > { %v1629_v14 = vadd.f32 %v1628_v45, %v4592_v15  ;;  %v1685_v7 = vadd.f32 %v1684_v60, %v3582_v6  ;;  %v4605_v45 = vld [vmem:[#allocation47_spill] sm:$0xff]  ;;  %v4606_v15 = vld [vmem:[#allocation84_spill] sm:$0xff] }
 0x198   : > { %v1630_v41 = vadd.f32 %v1629_v14, %v4593_v57  ;;  %v1686_v20 = vadd.f32 %v1685_v7, %v3586_v29  ;;  %v4607_v7 = vld [vmem:[#allocation85_spill] sm:$0xff] }
 0x19a   : > { %v1631_v59 = vadd.f32 %v1630_v41, %v4594_v48  ;;  %v1687_v19 = vadd.f32 %v1686_v20, %v3590_v11  ;;  %v4608_v41 = vld [vmem:[#allocation86_spill] sm:$0xff]  ;;  %v4609_v48 = vld [vmem:[#allocation87_spill] sm:$0xff] }
 0x19c   : > { %v1632_v62 = vadd.f32 %v1631_v59, %v4595_v35  ;;  %v1688_v1 = vadd.f32 %v1687_v19, %v3604_v53  ;;  %v4610_v19 = vld [vmem:[#allocation88_spill] sm:$0xff] }
 0x19e   : > { %v1633_v2 = vadd.f32 %v1632_v62, %v4596_v30  ;;  %v1689_v5 = vadd.f32 %v1688_v1, %v3608_v61  ;;  %v4611_v62 = vld [vmem:[#allocation89_spill] sm:$0xff]  ;;  %v4612_v30 = vld [vmem:[#allocation90_spill] sm:$0xff] }
 0x1a0   : > { %v1634_v46 = vadd.f32 %v1633_v2, %v4597_v63  ;;  %v1690_v6 = vadd.f32 %v1689_v5, %v3612_v22  ;;  %v4613_v5 = vld [vmem:[#allocation91_spill] sm:$0xff] }
 0x1a2   : > { %v1635_v43 = vadd.f32 %v1634_v46, %v4598_v52  ;;  %v1691_v29 = vadd.f32 %v1690_v6, %v3626_v56 }
 0x1a4   : > { %v1636_v16 = vadd.f32 %v1635_v43, %v4599_v24  ;;  %v1692_v11 = vadd.f32 %v1691_v29, %v3630_v10 }
 0x1a6   : > { %v1637_v54 = vadd.f32 %v1636_v16, %v4600_v55  ;;  %v1693_v53 = vadd.f32 %v1692_v11, %v3634_v28 }
 0x1a8   : > { %v1638_v40 = vadd.f32 %v1637_v54, %v4601_v4  ;;  %v1694_v61 = vadd.f32 %v1693_v53, %v3648_v27  ;;  %v4614_v54 = vld [vmem:[#allocation20_spill] sm:$0xff]  ;;  %v4615_v53 = vld [vmem:[#allocation21_spill] sm:$0xff] }
 0x1aa   : > { %v1639_v31 = vadd.f32 %v1638_v40, %v4602_v50  ;;  %v1695_v22 = vadd.f32 %v1694_v61, %v3652_v12  ;;  %v4617_v61 = vld [vmem:[#allocation23_spill] sm:$0xff] }
 0x1ac   : > { %v1640_v26 = vadd.f32 %v1639_v31, %v4603_v49  ;;  %v1696_v56 = vadd.f32 %v1695_v22, %v3656_v34 }
 0x1ae   : > { %v1641_v44 = vadd.f32 %v1640_v26, %v4604_v39  ;;  %v1697_v10 = vadd.f32 %v1696_v56, %v3670_v51 }
 0x1b0   : > { %v1642_v60 = vadd.f32 %v1641_v44, %v4605_v45  ;;  %v1698_v28 = vadd.f32 %v1697_v10, %v3674_v0 }
 0x1b2   : > { %v1643_v14 = vadd.f32 %v1642_v60, %v4606_v15  ;;  %v1699_v27 = vadd.f32 %v1698_v28, %v3678_v58 }
 0x1b4   : > { %v1644_v57 = vadd.f32 %v1643_v14, %v4607_v7  ;;  %v1700_v12 = vadd.f32 %v1699_v27, %v3692_v13 }
 0x1b6   : > { %v1645_v20 = vadd.f32 %v1644_v57, %v4608_v41  ;;  %v1701_v34 = vadd.f32 %v1700_v12, %v3696_v37 }
 0x1b8   : > { %v1646_v59 = vadd.f32 %v1645_v20, %v4609_v48  ;;  %v1702_v51 = vadd.f32 %v1701_v34, %v3700_v8 }
 0x1ba   : > { %v1647_v35 = vadd.f32 %v1646_v59, %v4610_v19  ;;  %v1703_v0 = vadd.f32 %v1702_v51, %v3714_v32 }
 0x1bc   : > { %v1648_v1 = vadd.f32 %v1647_v35, %v4611_v62  ;;  %v1704_v58 = vadd.f32 %v1703_v0, %v3718_v42 }
 0x1be   : > { %v1649_v2 = vadd.f32 %v1648_v1, %v4612_v30  ;;  %v1705_v13 = vadd.f32 %v1704_v58, %v3722_v33 }
 0x1c0   : > { %v1650_v63 = vadd.f32 %v1649_v2, %v4613_v5  ;;  %v1706_v37 = vadd.f32 %v1705_v13, %v3736_v21 }
 0x1c2   : > { %v1651_v46 = vrot.slane %v1650_v63, 4  ;;  %v1707_v6 = vadd.f32 %v1706_v37, %v3740_v17 }
 0x1c4   : > { %v1652_v8 = vadd.f32 %v1651_v46, %v1650_v63  ;;  %v1708_v52 = vadd.f32 %v1707_v6, %v3744_v36 }
 0x1c6   : > { %v1653_v43 = vrot.slane %v1652_v8, 2  ;;  %v1709_v32 = vadd.f32 %v1708_v52, %v3758_v47  ;;  %v4616_v47 = vld [vmem:[#allocation22_spill] sm:$0xff] }
 0x1c8   : > { %v1654_v29 = vadd.f32 %v1653_v43, %v1652_v8  ;;  %v1710_v42 = vadd.f32 %v1709_v32, %v3762_v38 }
 0x1ca   : > { %v1655_v24 = vrot.slane %v1654_v29, 1  ;;  %v1711_v16 = vadd.f32 %v1710_v42, %v3766_v25 }
 0x1cc   : > { %v1656_v33 = vadd.f32 %v1655_v24, %v1654_v29  ;;  %v1712_v11 = vadd.f32 %v1711_v16, %v3779_v3 }
 0x1ce   : > { %v1713_v21 = vadd.f32 %v1712_v11, %v3783_v23  ;;  %v4618_v23 = vld [vmem:[#allocation81_spill] sm:$0xff] (!%p1961_p4) }
 0x1d0   : > { %v1714_v55 = vadd.f32 %v1713_v21, %v3787_v18  ;;  %v1734_v18 = vsel (!%p1961_p4), %vm1733_vm7, %v1656_v33, %v4618_v23 }
 0x1d2   : > { %v1715_v17 = vadd.f32 %v1714_v55, %v3798_v9 }
 0x1d4   : > { %v1716_v36 = vadd.f32 %v1715_v17, %v4614_v54 }
 0x1d6   : > { %v1717_v4 = vadd.f32 %v1716_v36, %v4615_v53 }
 0x1d8   : > { %v1718_v40 = vadd.f32 %v1717_v4, %v4616_v47 }
 0x1da   : > { %v1719_v38 = vadd.f32 %v1718_v40, %v4617_v61 }
 0x1dc   : > { %v1720_v50 = vrot.slane %v1719_v38, 4 }
 0x1de   : > { %v1721_v31 = vadd.f32 %v1720_v50, %v1719_v38 }
 0x1e0   : > { %v1722_v25 = vrot.slane %v1721_v31, 2  ;;  %1729 = sbr.rel (%p1961_p4) target bundleno = 490 (0x1ea), region = 40 }
 0x1e2   : > { %v1723_v22 = vadd.f32 %v1722_v25, %v1721_v31 }
 0x1e4   : > { %v1724_v49 = vrot.slane %v1723_v22, 1 }
 0x1e6   : > { %v1725_v3 = vadd.f32 %v1724_v49, %v1723_v22 }
 0x1e8   : > { %v1736_v9 = vsel %vm1735_vm5, %v1725_v3, %v1734_v18 }
 0x1e9   : > { %1738 = vst [vmem:[%s3970_s3] sm:$0x7] %v1736_v9 }
 0x1ea PF: > { %p1962_p8 = scmp.eq.s32.totalorder %s2126_s15, 0 }
 0x1eb   : > { %vm1747_vm6 = vcmask (!%p1962_p8), 1041409   ;;  %vm1749_vm4 = vcmask (!%p1962_p8), 1042434   ;;  %v4619_v56 = vld [vmem:[#allocation81_spill] sm:$0xff] (!%p1962_p8) }
 0x1ec   : > { %1742 = sbr.rel (%p1962_p8) target bundleno = 500 (0x1f4), region = 44  ;;  %v1748_v39 = vsel (!%p1962_p8), %vm1747_vm6, %v1656_v33, %v4619_v56 }
 0x1ed   : > { %v1750_v44 = vsel (!%p1962_p8), %vm1749_vm4, %v1725_v3, %v1748_v39 }
 0x1f0   : > { %v1743_v26 = vld [vmem:[%s3970_s3] sm:$0x7] (!%p1962_p8) }
 0x1f1   : > { %v1752_v10 = vadd.f32 (!%p1962_p8), %v1750_v44, %v1743_v26 }
 0x1f3   : > { %1753 = vst [vmem:[%s3970_s3] sm:$0x7] %v1752_v10 }
 0x1f4 PF: > { %s1755_s6 = scalar_lea.sflag [#allocation4], %s2279_s11  ;;  %p4620_p9 = scmp.ne.s32.totalorder %s4190_s25, 0 }
 0x1f6   : > { %1765 = sbr.rel (!%p4620_p9) target bundleno = 527 (0x20f), region = 48 }
 0x1fd   : > { %s1963_s8 = sshll.u32 %s2126_s15, 6 }
 0x1fe   : > { %s1769_s9 = ssub.s32 133, %s1963_s8 }
 0x1ff   : > { %p1770_p11 = scmp.lt.s32.totalorder %s1769_s9, 64 }
 0x201   : > { %s4634_s9 = smov (!%p1770_p11, %s1769_s9), 64 }
 0x202   : > { %s1772_s10 = smul.u32 384, %s4634_s9 }
 0x204   : > { %s1774_s4 = ssub.s32 24576, %s1772_s10 }
 0x205   : > { %1775 = vsyncadd %s1755_s6, %s1774_s4  ;;  %p1964_p12 = scmp.ne.s32.totalorder %s1772_s10, 0  ;;  %s1974_s20 = sshll.u32 %s2126_s15, 13 }
 0x206   : > { %s1778_s25 = scalar_lea.hbm %s3969_s2, %s1974_s20  ;;  %s1797_s22 = sshll.u32 %s2337_s24, 4  ;;  %s1798_s22 = int_to_ptr.vmem [resolvable:$true] %s1797_s22 }
 0x207   : > { %s2145_s23 = smov 8192   ;;  %s2146_s19 = smov 17024  }
 0x208   : > { %1804 = sst [smem:[#allocation11]] %s2145_s23  ;;  %s2147_s26 = smov 128  }
 0x209   : > { %1806 = sst [smem:[#allocation11 + $0x1]] %s2146_s19  ;;  %s2148_s18 = smov 8  }
 0x20a   : > { %1808 = sst [smem:[#allocation11 + $0x2]] %s4634_s9  ;;  %s2149_s21 = smov [#allocation10]  }
 0x20b   : > { %1810 = sst [smem:[#allocation11 + $0x3]] %s2147_s26  ;;  %s2150_s29 = smov 0  }
 0x20c   : > { %1812 = sst [smem:[#allocation11 + $0x4]] %s2147_s26 }
 0x20d   : > { %1814 = sst [smem:[#allocation11 + $0x5]] %s2148_s18 }
 0x20e   : > { %1816 = dma.general (%p1964_p12), %s1798_s22, %s1772_s10, %s1778_s25, %s1755_s6, %s2149_s21, [#allocation11], %s2150_s29, 0  }
 0x20f PF: > { %p1985_p13 = scmp.ge.s32.totalorder %s2134_s17, 2  ;;  %s1835_s15 = sand.u32 1, %s2114_s12  }
 0x210   : > { %p4621_p0 = scmp.ne.s32.totalorder %s4192_s27, 0  ;;  %s1836_s24 = scalar_lea.sflag [#allocation4], %s1835_s15 }
 0x212   : > { %p1982_p1 = pnand %p1985_p13, %p4621_p0 }
 0x214   : > { %2109 = dma.done.wait (!%p1982_p1), %s1836_s24, 24576  }
 0x215   : > { %2111 = vsyncadd (!%p1982_p1), %s1836_s24, 4294942720  ;;  %s23_s17 = sadd.s32 1, %s2134_s17   ;;  %s4622_s28 = sld [smem:[#allocation16_spill]] }
 0x216   : > { %p20_p2 = scmp.ge.s32.totalorder %s23_s17, 5   ;;  %s4623_s11 = sld [smem:[#allocation15_spill]] }
 0x217   : > { %s4624_s12 = smov %s2118_s13  ;;  %s4625_s13 = smov %s2122_s14 }
 0x218   : > { %s4627_s15 = smov %s2130_s16  ;;  %22 = sbr.rel (!%p20_p2) target bundleno = 8 (0x8), region = 116 }
 0x21b   : > { %s4626_s14 = smov %s4622_s28 }
 0x21c   : > { %s4628_s16 = smov %s4623_s11 }
 0x21f   :  { %1841 = vsyncpa [#allocation3], 1 }
 0x220   :  { %1843 = vsyncpa [#allocation3 + $0x1], 1 }
 0x221   :  { %1844 = vsyncpa [#allocation6], 1 }
 0x222   :  { %1846 = vsyncpa [#allocation6 + $0x1], 1 }
 0x223   :  { %1847 = vsyncpa [#allocation4], 1 }
 0x224   :  { %1849 = vsyncpa [#allocation4 + $0x1], 1 }

</bundles_post_ra>
